<compile_context>
chip_gen: v7x
topology: tpu7x:2x2x1
jax: 0.10.0
libtpu: 0.0.40
codegen_flags: <defaults>
</compile_context>

<pallas_src>
import math
from functools import partial

import jax
import jax.numpy as jnp
from jax import lax
from jax.experimental import pallas as pl
from jax.experimental.pallas import tpu as pltpu


def _mha_kernel(*args, n_heads, d_k, d_model, block_q, seq, zero_pad,
                use_forget, use_mask, causal_offset, kq_same, compute_dtype,
                approx_recip):
    it = iter(args)
    q_ref = next(it)
    k_ref = next(it)
    v_ref = next(it)
    mask_ref = next(it) if use_mask else None
    fr_ref = next(it) if use_forget else None
    if kq_same:
        wk_ref = next(it); bk_ref = next(it)
        wq_ref, bq_ref = wk_ref, bk_ref            # q_linear := k_linear
    else:
        wq_ref = next(it); bq_ref = next(it)
        wk_ref = next(it); bk_ref = next(it)
    wv_ref = next(it); bv_ref = next(it)
    wo_ref = next(it); bo_ref = next(it)
    o_ref = next(it)

    scale = jnp.float32(1.0 / math.sqrt(d_k))
    neg = jnp.float32(-1e32)
    q_start = pl.program_id(1) * block_q

    xq = q_ref[0].astype(compute_dtype)            # (block_q, d_model)
    xk = k_ref[0].astype(compute_dtype)            # (seq, d_model)
    xv = v_ref[0].astype(compute_dtype)            # (seq, d_model)

    # ---- loop-invariant setup (hoisted out of the per-head loop) ----
    if use_mask:
        keep = mask_ref[0] != 0                                        # (block_q, seq)
    else:
        row = lax.broadcasted_iota(jnp.int32, (block_q, seq), 0) + q_start
        col = lax.broadcasted_iota(jnp.int32, (block_q, seq), 1)
        keep = col <= row + causal_offset                              # causal in-kernel
    if use_forget:
        fr = fr_ref[0]                                                 # (block_q, 1) f32

    acc = jnp.zeros((block_q, d_model), jnp.float32)
    for hd in range(n_heads):        # static unroll; leading-dim (head) indexing only
        qh = (jnp.dot(xq, wq_ref[hd], preferred_element_type=jnp.float32)
              + bq_ref[hd]).astype(compute_dtype)                      # (block_q, d_k)
        kh = (jnp.dot(xk, wk_ref[hd], preferred_element_type=jnp.float32)
              + bk_ref[hd]).astype(compute_dtype)                      # (seq, d_k)
        vh = (jnp.dot(xv, wv_ref[hd], preferred_element_type=jnp.float32)
              + bv_ref[hd]).astype(compute_dtype)                      # (seq, d_k)

        # scores = q k^T / sqrt(d_k); contract d_k of both operands (no transpose).
        s = lax.dot_general(qh, kh, (((1,), (1,)), ((), ())),
                            preferred_element_type=jnp.float32) * scale  # (block_q, seq)

        if use_forget:
            s = s * fr                       # forget applied BEFORE mask fill (as in torch)
        s = jnp.where(keep, s, neg)          # masked_fill_(mask == 0, -1e32)

        # numerically stable softmax over keys
        m = jnp.max(s, axis=-1, keepdims=True)
        e = jnp.exp(s - m)
        p = (e * pl.reciprocal(jnp.sum(e, axis=-1, keepdims=True),
                               approx=approx_recip)).astype(compute_dtype)

        # dropout: identity in eval mode
        oh = jnp.dot(p, vh, preferred_element_type=jnp.float32)        # (block_q, d_k)
        # fold out_proj into the head loop: acc += O_h @ Wo[h*d_k:(h+1)*d_k, :]
        acc = acc + jnp.dot(oh.astype(compute_dtype), wo_ref[hd],
                            preferred_element_type=jnp.float32)        # (block_q, d_model)

    if zero_pad:
        # zeroing P row 0 == zeroing the pre-bias output row 0 (global query row 0)
        grow = lax.broadcasted_iota(jnp.int32, (block_q, 1), 0) + q_start
        acc = jnp.where(grow == 0, jnp.float32(0.0), acc)

    o_ref[0] = (acc + bo_ref[...]).astype(o_ref.dtype)


def multi_head_attention(q, k, v, params, *, n_heads, d_k, mask=None,
                         causal_offset=0, zero_pad=False, forget_rate=None,
                         kq_same=False, compute_dtype=jnp.bfloat16, block_q=None):
    bs, seq, d_model = q.shape
    assert n_heads * d_k == d_model

    if block_q is None:
        block_q = seq if seq <= 512 else 512
    assert seq % block_q == 0 and (block_q % 8 == 0 or block_q == seq)
    n_q = seq // block_q

    cdt = jnp.dtype(compute_dtype)
    approx_recip = cdt != jnp.dtype(jnp.float32)

    def split_w(w):   # (d_model, d_model) stored (in, out) -> (n_heads, d_model, d_k)
        return w.reshape(d_model, n_heads, d_k).transpose(1, 0, 2).astype(cdt)

    def split_b(b):   # (d_model,) -> (n_heads, 1, d_k)
        return b.reshape(n_heads, 1, d_k).astype(jnp.float32)

    use_mask = mask is not None
    use_forget = forget_rate is not None

    q_spec = pl.BlockSpec((1, block_q, d_model), lambda b, t: (b, t, 0))
    kv_spec = pl.BlockSpec((1, seq, d_model), lambda b, t: (b, 0, 0))
    w_spec = pl.BlockSpec((n_heads, d_model, d_k), lambda b, t: (0, 0, 0))
    wo_spec = pl.BlockSpec((n_heads, d_k, d_model), lambda b, t: (0, 0, 0))
    bh_spec = pl.BlockSpec((n_heads, 1, d_k), lambda b, t: (0, 0, 0))
    bo_spec = pl.BlockSpec((1, d_model), lambda b, t: (0, 0))

    inputs = [q, k, v]
    in_specs = [q_spec, kv_spec, kv_spec]
    if use_mask:
        m = (jnp.asarray(mask).reshape(1, seq, seq) != 0).astype(jnp.int32)
        inputs.append(m)
        in_specs.append(pl.BlockSpec((1, block_q, seq), lambda b, t: (0, t, 0)))
    if use_forget:
        inputs.append(forget_rate.astype(jnp.float32).reshape(bs, seq, 1))
        in_specs.append(pl.BlockSpec((1, block_q, 1), lambda b, t: (b, t, 0)))
    if not kq_same:
        inputs += [split_w(params["wq"]), split_b(params["bq"])]
        in_specs += [w_spec, bh_spec]
    inputs += [split_w(params["wk"]), split_b(params["bk"]),
               split_w(params["wv"]), split_b(params["bv"]),
               params["wo"].reshape(n_heads, d_k, d_model).astype(cdt),
               params["bo"].reshape(1, d_model).astype(jnp.float32)]
    in_specs += [w_spec, bh_spec, w_spec, bh_spec, wo_spec, bo_spec]

    kernel = partial(_mha_kernel, n_heads=n_heads, d_k=d_k, d_model=d_model,
                     block_q=block_q, seq=seq, zero_pad=zero_pad,
                     use_forget=use_forget, use_mask=use_mask,
                     causal_offset=causal_offset, kq_same=kq_same,
                     compute_dtype=cdt, approx_recip=approx_recip)

    flops = int(bs * (2 * seq * d_model * d_model * (2 + 2 * n_q)
                      + 4 * seq * seq * d_model))
    transcendentals = int(bs * n_heads * seq * seq)
    bytes_accessed = int(sum(int(x.size) * x.dtype.itemsize for x in inputs)
                         + bs * seq * d_model * jnp.dtype(q.dtype).itemsize)

    return pl.pallas_call(
        kernel,
        out_shape=jax.ShapeDtypeStruct((bs, seq, d_model), q.dtype),
        grid=(bs, n_q),
        in_specs=in_specs,
        out_specs=pl.BlockSpec((1, block_q, d_model), lambda b, t: (b, t, 0)),
        compiler_params=pltpu.CompilerParams(
            dimension_semantics=("parallel", "parallel"),
            vmem_limit_bytes=64 * 1024 * 1024),
        cost_estimate=pl.CostEstimate(flops=flops,
                                      transcendentals=transcendentals,
                                      bytes_accessed=bytes_accessed),
    )(*inputs)


def _reference(q, k, v, params, *, n_heads, d_k, mask=None, causal_offset=0,
               zero_pad=False, forget_rate=None, kq_same=False):
    # Pure-JAX reference mirroring the PyTorch forward (eval mode).
    bs, seq, d_model = q.shape
    wq = params["wk"] if kq_same else params["wq"]
    bq = params["bk"] if kq_same else params["bq"]
    Q = (q @ wq + bq).reshape(bs, seq, n_heads, d_k).transpose(0, 2, 1, 3)
    K = (k @ params["wk"] + params["bk"]).reshape(bs, seq, n_heads, d_k).transpose(0, 2, 1, 3)
    V = (v @ params["wv"] + params["bv"]).reshape(bs, seq, n_heads, d_k).transpose(0, 2, 1, 3)
    s = jnp.einsum("bhqd,bhkd->bhqk", Q, K) / math.sqrt(d_k)
    if forget_rate is not None:
        s = s * forget_rate[:, None, :, :]
    if mask is None:
        m = jnp.tril(jnp.ones((seq, seq), jnp.float32), k=causal_offset)[None, None]
    else:
        m = jnp.asarray(mask).reshape(1, 1, seq, seq)
    s = jnp.where(m == 0, -1e32, s)
    p = jax.nn.softmax(s, axis=-1)
    if zero_pad:
        p = p.at[:, :, 0, :].set(0.0)
    o = jnp.einsum("bhqk,bhkd->bhqd", p, V).transpose(0, 2, 1, 3).reshape(bs, seq, d_model)
    return o @ params["wo"] + params["bo"]


if __name__ == "__main__":
    d_model, n_heads = 32, 4
    d_k = d_model // n_heads

    key = jax.random.PRNGKey(0)
    ks = jax.random.split(key, 10)

    # xavier_uniform_ for q/k/v linear weights; zero biases (constant_(..., 0.0)).
    xav = math.sqrt(6.0 / (d_model + d_model))
    outb = 1.0 / math.sqrt(d_model)
    params = {
        "wq": jax.random.uniform(ks[0], (d_model, d_model), jnp.float32, -xav, xav),
        "wk": jax.random.uniform(ks[1], (d_model, d_model), jnp.float32, -xav, xav),
        "wv": jax.random.uniform(ks[2], (d_model, d_model), jnp.float32, -xav, xav),
        "wo": jax.random.uniform(ks[3], (d_model, d_model), jnp.float32, -outb, outb),
        "bq": jnp.zeros((d_model,), jnp.float32),
        "bk": jnp.zeros((d_model,), jnp.float32),
        "bv": jnp.zeros((d_model,), jnp.float32),
        "bo": jnp.zeros((d_model,), jnp.float32),
    }

    # ---- Config A: primary parKT path -------------------------------------
    # in-kernel causal mask, forget_rate, zero_pad, bf16 matmul inputs.
    bs, seq = 2, 8
    q = jax.random.normal(ks[4], (bs, seq, d_model), jnp.float32)
    k = jax.random.normal(ks[5], (bs, seq, d_model), jnp.float32)
    v = jax.random.normal(ks[6], (bs, seq, d_model), jnp.float32)
    forget_rate = 0.5 + 0.5 * jax.random.uniform(ks[7], (bs, seq, 1), jnp.float32)

    out_a = multi_head_attention(q, k, v, params, n_heads=n_heads, d_k=d_k,
                                 mask=None, causal_offset=0, zero_pad=True,
                                 forget_rate=forget_rate, kq_same=False,
                                 compute_dtype=jnp.bfloat16)
    out_a = jax.block_until_ready(out_a)
    ref_a = _reference(q, k, v, params, n_heads=n_heads, d_k=d_k, mask=None,
                       causal_offset=0, zero_pad=True, forget_rate=forget_rate,
                       kq_same=False)
    assert out_a.shape == (bs, seq, d_model)
    assert jnp.allclose(out_a, ref_a, atol=5e-2, rtol=5e-2), "config A mismatch"

    # ---- Config B: explicit mask path --------------------------------------
    # explicit strict-lower mask, q-tiling (block_q=8), kq_same, f32 compute.
    bs2, seq2 = 2, 16
    q2 = jax.random.normal(ks[8], (bs2, seq2, d_model), jnp.float32)
    k2 = q2
    v2 = jax.random.normal(ks[9], (bs2, seq2, d_model), jnp.float32)
    mask2 = jnp.tril(jnp.ones((1, seq2, seq2), jnp.float32), k=-1)

    out_b = multi_head_attention(q2, k2, v2, params, n_heads=n_heads, d_k=d_k,
                                 mask=mask2, zero_pad=False, forget_rate=None,
                                 kq_same=True, compute_dtype=jnp.float32,
                                 block_q=8)
    out_b = jax.block_until_ready(out_b)
    ref_b = _reference(q2, k2, v2, params, n_heads=n_heads, d_k=d_k, mask=mask2,
                       zero_pad=False, forget_rate=None, kq_same=True)
    assert out_b.shape == (bs2, seq2, d_model)
    assert jnp.allclose(out_b, ref_b, atol=1e-4, rtol=1e-4), "config B mismatch"

    print("KERNEL_OK")
</pallas_src>

<mosaic_0001>
module attributes {stable_mosaic.version = 11 : i64} {
  func.func @_mha_kernel(%arg0: i32, %arg1: i32, %arg2: memref<1x8x32xf32, #tpu.memory_space<vmem>>, %arg3: memref<1x8x32xf32, #tpu.memory_space<vmem>>, %arg4: memref<1x8x32xf32, #tpu.memory_space<vmem>>, %arg5: memref<1x8x1xf32, #tpu.memory_space<vmem>>, %arg6: memref<4x32x8xbf16, #tpu.memory_space<vmem>>, %arg7: memref<4x1x8xf32, #tpu.memory_space<vmem>>, %arg8: memref<4x32x8xbf16, #tpu.memory_space<vmem>>, %arg9: memref<4x1x8xf32, #tpu.memory_space<vmem>>, %arg10: memref<4x32x8xbf16, #tpu.memory_space<vmem>>, %arg11: memref<4x1x8xf32, #tpu.memory_space<vmem>>, %arg12: memref<4x8x32xbf16, #tpu.memory_space<vmem>>, %arg13: memref<1x32xf32, #tpu.memory_space<vmem>>, %arg14: memref<1x8x32xf32, #tpu.memory_space<vmem>>) attributes {dimension_semantics = [#tpu.dimension_semantics<parallel>, #tpu.dimension_semantics<parallel>], iteration_bounds = array<i64: 2, 1>, scalar_prefetch = 0 : i64, scratch_operands = 0 : i64, tpu.core_type = #tpu.core_type<tc>, window_params = [{transform_indices = @transform_0, window_bounds = array<i64: 1, 8, 32>}, {transform_indices = @transform_1, window_bounds = array<i64: 1, 8, 32>}, {transform_indices = @transform_2, window_bounds = array<i64: 1, 8, 32>}, {transform_indices = @transform_3, window_bounds = array<i64: 1, 8, 1>}, {pipeline_mode = #tpu.pipeline_mode<synchronous>, transform_indices = @transform_4, window_bounds = array<i64: 4, 32, 8>}, {pipeline_mode = #tpu.pipeline_mode<synchronous>, transform_indices = @transform_5, window_bounds = array<i64: 4, 1, 8>}, {pipeline_mode = #tpu.pipeline_mode<synchronous>, transform_indices = @transform_6, window_bounds = array<i64: 4, 32, 8>}, {pipeline_mode = #tpu.pipeline_mode<synchronous>, transform_indices = @transform_7, window_bounds = array<i64: 4, 1, 8>}, {pipeline_mode = #tpu.pipeline_mode<synchronous>, transform_indices = @transform_8, window_bounds = array<i64: 4, 32, 8>}, {pipeline_mode = #tpu.pipeline_mode<synchronous>, transform_indices = @transform_9, window_bounds = array<i64: 4, 1, 8>}, {pipeline_mode = #tpu.pipeline_mode<synchronous>, transform_indices = @transform_10, window_bounds = array<i64: 4, 8, 32>}, {pipeline_mode = #tpu.pipeline_mode<synchronous>, transform_indices = @transform_11, window_bounds = array<i64: 1, 32>}, {transform_indices = @transform_12, window_bounds = array<i64: 1, 8, 32>}]} {
    %c8_i32 = arith.constant 8 : i32
    %0 = arith.muli %arg1, %c8_i32 : i32
    %c0 = arith.constant 0 : index
    %c0_0 = arith.constant 0 : index
    %c0_1 = arith.constant 0 : index
    %1 = vector.load %arg2[%c0, %c0_0, %c0_1] : memref<1x8x32xf32, #tpu.memory_space<vmem>>, vector<1x8x32xf32>
    %2 = vector.shape_cast %1 : vector<1x8x32xf32> to vector<8x32xf32>
    %3 = arith.truncf %2 : vector<8x32xf32> to vector<8x32xbf16>
    %c0_2 = arith.constant 0 : index
    %c0_3 = arith.constant 0 : index
    %c0_4 = arith.constant 0 : index
    %4 = vector.load %arg3[%c0_2, %c0_3, %c0_4] : memref<1x8x32xf32, #tpu.memory_space<vmem>>, vector<1x8x32xf32>
    %5 = vector.shape_cast %4 : vector<1x8x32xf32> to vector<8x32xf32>
    %6 = arith.truncf %5 : vector<8x32xf32> to vector<8x32xbf16>
    %c0_5 = arith.constant 0 : index
    %c0_6 = arith.constant 0 : index
    %c0_7 = arith.constant 0 : index
    %7 = vector.load %arg4[%c0_5, %c0_6, %c0_7] : memref<1x8x32xf32, #tpu.memory_space<vmem>>, vector<1x8x32xf32>
    %8 = vector.shape_cast %7 : vector<1x8x32xf32> to vector<8x32xf32>
    %9 = arith.truncf %8 : vector<8x32xf32> to vector<8x32xbf16>
    %10 = tpu.iota {dimensions = array<i32: 0>} : vector<8x8xi32>
    %11 = vector.broadcast %0 : i32 to vector<8x8xi32>
    %12 = arith.addi %10, %11 : vector<8x8xi32>
    %13 = tpu.iota {dimensions = array<i32: 1>} : vector<8x8xi32>
    %c0_i32 = arith.constant 0 : i32
    %14 = vector.broadcast %c0_i32 : i32 to vector<8x8xi32>
    %15 = arith.addi %12, %14 : vector<8x8xi32>
    %16 = arith.cmpi sle, %13, %15 : vector<8x8xi32>
    %c0_8 = arith.constant 0 : index
    %c0_9 = arith.constant 0 : index
    %c0_10 = arith.constant 0 : index
    %17 = vector.load %arg5[%c0_8, %c0_9, %c0_10] : memref<1x8x1xf32, #tpu.memory_space<vmem>>, vector<1x8x1xf32>
    %18 = vector.shape_cast %17 : vector<1x8x1xf32> to vector<8x1xf32>
    %cst = arith.constant 0.000000e+00 : f32
    %19 = vector.broadcast %cst : f32 to vector<8x32xf32>
    %c0_11 = arith.constant 0 : index
    %c0_12 = arith.constant 0 : index
    %c0_13 = arith.constant 0 : index
    %20 = vector.load %arg6[%c0_11, %c0_12, %c0_13] : memref<4x32x8xbf16, #tpu.memory_space<vmem>>, vector<1x32x8xbf16>
    %21 = vector.shape_cast %20 : vector<1x32x8xbf16> to vector<32x8xbf16>
    %cst_14 = arith.constant dense<0.000000e+00> : vector<8x8xf32>
    %22 = tpu.matmul %3, %21, %cst_14 {dimension_numbers = #tpu.dot_dimension_numbers<[1], [0], [0], [1], [0, 0, 1, 1], [], []>} : vector<8x32xbf16>, vector<32x8xbf16>, vector<8x8xf32> -> vector<8x8xf32>
    %c0_15 = arith.constant 0 : index
    %c0_16 = arith.constant 0 : index
    %c0_17 = arith.constant 0 : index
    %23 = vector.load %arg7[%c0_15, %c0_16, %c0_17] : memref<4x1x8xf32, #tpu.memory_space<vmem>>, vector<1x1x8xf32>
    %24 = vector.shape_cast %23 : vector<1x1x8xf32> to vector<1x8xf32>
    %25 = vector.broadcast %24 : vector<1x8xf32> to vector<8x8xf32>
    %26 = arith.addf %22, %25 : vector<8x8xf32>
    %27 = arith.truncf %26 : vector<8x8xf32> to vector<8x8xbf16>
    %c0_18 = arith.constant 0 : index
    %c0_19 = arith.constant 0 : index
    %c0_20 = arith.constant 0 : index
    %28 = vector.load %arg8[%c0_18, %c0_19, %c0_20] : memref<4x32x8xbf16, #tpu.memory_space<vmem>>, vector<1x32x8xbf16>
    %29 = vector.shape_cast %28 : vector<1x32x8xbf16> to vector<32x8xbf16>
    %cst_21 = arith.constant dense<0.000000e+00> : vector<8x8xf32>
    %30 = tpu.matmul %6, %29, %cst_21 {dimension_numbers = #tpu.dot_dimension_numbers<[1], [0], [0], [1], [0, 0, 1, 1], [], []>} : vector<8x32xbf16>, vector<32x8xbf16>, vector<8x8xf32> -> vector<8x8xf32>
    %c0_22 = arith.constant 0 : index
    %c0_23 = arith.constant 0 : index
    %c0_24 = arith.constant 0 : index
    %31 = vector.load %arg9[%c0_22, %c0_23, %c0_24] : memref<4x1x8xf32, #tpu.memory_space<vmem>>, vector<1x1x8xf32>
    %32 = vector.shape_cast %31 : vector<1x1x8xf32> to vector<1x8xf32>
    %33 = vector.broadcast %32 : vector<1x8xf32> to vector<8x8xf32>
    %34 = arith.addf %30, %33 : vector<8x8xf32>
    %35 = arith.truncf %34 : vector<8x8xf32> to vector<8x8xbf16>
    %c0_25 = arith.constant 0 : index
    %c0_26 = arith.constant 0 : index
    %c0_27 = arith.constant 0 : index
    %36 = vector.load %arg10[%c0_25, %c0_26, %c0_27] : memref<4x32x8xbf16, #tpu.memory_space<vmem>>, vector<1x32x8xbf16>
    %37 = vector.shape_cast %36 : vector<1x32x8xbf16> to vector<32x8xbf16>
    %cst_28 = arith.constant dense<0.000000e+00> : vector<8x8xf32>
    %38 = tpu.matmul %9, %37, %cst_28 {dimension_numbers = #tpu.dot_dimension_numbers<[1], [0], [0], [1], [0, 0, 1, 1], [], []>} : vector<8x32xbf16>, vector<32x8xbf16>, vector<8x8xf32> -> vector<8x8xf32>
    %c0_29 = arith.constant 0 : index
    %c0_30 = arith.constant 0 : index
    %c0_31 = arith.constant 0 : index
    %39 = vector.load %arg11[%c0_29, %c0_30, %c0_31] : memref<4x1x8xf32, #tpu.memory_space<vmem>>, vector<1x1x8xf32>
    %40 = vector.shape_cast %39 : vector<1x1x8xf32> to vector<1x8xf32>
    %41 = vector.broadcast %40 : vector<1x8xf32> to vector<8x8xf32>
    %42 = arith.addf %38, %41 : vector<8x8xf32>
    %43 = arith.truncf %42 : vector<8x8xf32> to vector<8x8xbf16>
    %cst_32 = arith.constant dense<0.000000e+00> : vector<8x8xf32>
    %44 = tpu.matmul %27, %35, %cst_32 {dimension_numbers = #tpu.dot_dimension_numbers<[1], [1], [0], [0], [0, 0, 1, 0], [], []>} : vector<8x8xbf16>, vector<8x8xbf16>, vector<8x8xf32> -> vector<8x8xf32>
    %cst_33 = arith.constant 0.353553385 : f32
    %45 = vector.broadcast %cst_33 : f32 to vector<8x8xf32>
    %46 = arith.mulf %44, %45 : vector<8x8xf32>
    %47 = vector.broadcast %18 : vector<8x1xf32> to vector<8x8xf32>
    %48 = arith.mulf %46, %47 : vector<8x8xf32>
    %cst_34 = arith.constant -1.000000e+32 : f32
    %49 = vector.broadcast %cst_34 : f32 to vector<8x8xf32>
    %50 = arith.select %16, %48, %49 : vector<8x8xi1>, vector<8x8xf32>
    %cst_35 = arith.constant dense<0xFF800000> : vector<8xf32>
    %51 = vector.multi_reduction <maximumf>, %50, %cst_35 [1] : vector<8x8xf32> to vector<8xf32>
    %52 = vector.shape_cast %51 : vector<8xf32> to vector<8x1xf32>
    %53 = vector.broadcast %52 : vector<8x1xf32> to vector<8x8xf32>
    %54 = arith.subf %50, %53 : vector<8x8xf32>
    %55 = math.exp %54 : vector<8x8xf32>
    %cst_36 = arith.constant dense<0.000000e+00> : vector<8xf32>
    %56 = vector.multi_reduction <add>, %55, %cst_36 [1] : vector<8x8xf32> to vector<8xf32>
    %57 = vector.shape_cast %56 : vector<8xf32> to vector<8x1xf32>
    %58 = tpu.reciprocal %57 {approx = true} : vector<8x1xf32> -> vector<8x1xf32>
    %59 = vector.broadcast %58 : vector<8x1xf32> to vector<8x8xf32>
    %60 = arith.mulf %55, %59 : vector<8x8xf32>
    %61 = arith.truncf %60 : vector<8x8xf32> to vector<8x8xbf16>
    %cst_37 = arith.constant dense<0.000000e+00> : vector<8x8xf32>
    %62 = tpu.matmul %61, %43, %cst_37 {dimension_numbers = #tpu.dot_dimension_numbers<[1], [0], [0], [1], [0, 0, 1, 1], [], []>} : vector<8x8xbf16>, vector<8x8xbf16>, vector<8x8xf32> -> vector<8x8xf32>
    %63 = arith.truncf %62 : vector<8x8xf32> to vector<8x8xbf16>
    %c0_38 = arith.constant 0 : index
    %c0_39 = arith.constant 0 : index
    %c0_40 = arith.constant 0 : index
    %64 = vector.load %arg12[%c0_38, %c0_39, %c0_40] : memref<4x8x32xbf16, #tpu.memory_space<vmem>>, vector<1x8x32xbf16>
    %65 = vector.shape_cast %64 : vector<1x8x32xbf16> to vector<8x32xbf16>
    %cst_41 = arith.constant dense<0.000000e+00> : vector<8x32xf32>
    %66 = tpu.matmul %63, %65, %cst_41 {dimension_numbers = #tpu.dot_dimension_numbers<[1], [0], [0], [1], [0, 0, 1, 1], [], []>} : vector<8x8xbf16>, vector<8x32xbf16>, vector<8x32xf32> -> vector<8x32xf32>
    %67 = arith.addf %19, %66 : vector<8x32xf32>
    %c1 = arith.constant 1 : index
    %c0_42 = arith.constant 0 : index
    %c0_43 = arith.constant 0 : index
    %68 = vector.load %arg6[%c1, %c0_42, %c0_43] : memref<4x32x8xbf16, #tpu.memory_space<vmem>>, vector<1x32x8xbf16>
    %69 = vector.shape_cast %68 : vector<1x32x8xbf16> to vector<32x8xbf16>
    %cst_44 = arith.constant dense<0.000000e+00> : vector<8x8xf32>
    %70 = tpu.matmul %3, %69, %cst_44 {dimension_numbers = #tpu.dot_dimension_numbers<[1], [0], [0], [1], [0, 0, 1, 1], [], []>} : vector<8x32xbf16>, vector<32x8xbf16>, vector<8x8xf32> -> vector<8x8xf32>
    %c1_45 = arith.constant 1 : index
    %c0_46 = arith.constant 0 : index
    %c0_47 = arith.constant 0 : index
    %71 = vector.load %arg7[%c1_45, %c0_46, %c0_47] : memref<4x1x8xf32, #tpu.memory_space<vmem>>, vector<1x1x8xf32>
    %72 = vector.shape_cast %71 : vector<1x1x8xf32> to vector<1x8xf32>
    %73 = vector.broadcast %72 : vector<1x8xf32> to vector<8x8xf32>
    %74 = arith.addf %70, %73 : vector<8x8xf32>
    %75 = arith.truncf %74 : vector<8x8xf32> to vector<8x8xbf16>
    %c1_48 = arith.constant 1 : index
    %c0_49 = arith.constant 0 : index
    %c0_50 = arith.constant 0 : index
    %76 = vector.load %arg8[%c1_48, %c0_49, %c0_50] : memref<4x32x8xbf16, #tpu.memory_space<vmem>>, vector<1x32x8xbf16>
    %77 = vector.shape_cast %76 : vector<1x32x8xbf16> to vector<32x8xbf16>
    %cst_51 = arith.constant dense<0.000000e+00> : vector<8x8xf32>
    %78 = tpu.matmul %6, %77, %cst_51 {dimension_numbers = #tpu.dot_dimension_numbers<[1], [0], [0], [1], [0, 0, 1, 1], [], []>} : vector<8x32xbf16>, vector<32x8xbf16>, vector<8x8xf32> -> vector<8x8xf32>
    %c1_52 = arith.constant 1 : index
    %c0_53 = arith.constant 0 : index
    %c0_54 = arith.constant 0 : index
    %79 = vector.load %arg9[%c1_52, %c0_53, %c0_54] : memref<4x1x8xf32, #tpu.memory_space<vmem>>, vector<1x1x8xf32>
    %80 = vector.shape_cast %79 : vector<1x1x8xf32> to vector<1x8xf32>
    %81 = vector.broadcast %80 : vector<1x8xf32> to vector<8x8xf32>
    %82 = arith.addf %78, %81 : vector<8x8xf32>
    %83 = arith.truncf %82 : vector<8x8xf32> to vector<8x8xbf16>
    %c1_55 = arith.constant 1 : index
    %c0_56 = arith.constant 0 : index
    %c0_57 = arith.constant 0 : index
    %84 = vector.load %arg10[%c1_55, %c0_56, %c0_57] : memref<4x32x8xbf16, #tpu.memory_space<vmem>>, vector<1x32x8xbf16>
    %85 = vector.shape_cast %84 : vector<1x32x8xbf16> to vector<32x8xbf16>
    %cst_58 = arith.constant dense<0.000000e+00> : vector<8x8xf32>
    %86 = tpu.matmul %9, %85, %cst_58 {dimension_numbers = #tpu.dot_dimension_numbers<[1], [0], [0], [1], [0, 0, 1, 1], [], []>} : vector<8x32xbf16>, vector<32x8xbf16>, vector<8x8xf32> -> vector<8x8xf32>
    %c1_59 = arith.constant 1 : index
    %c0_60 = arith.constant 0 : index
    %c0_61 = arith.constant 0 : index
    %87 = vector.load %arg11[%c1_59, %c0_60, %c0_61] : memref<4x1x8xf32, #tpu.memory_space<vmem>>, vector<1x1x8xf32>
    %88 = vector.shape_cast %87 : vector<1x1x8xf32> to vector<1x8xf32>
    %89 = vector.broadcast %88 : vector<1x8xf32> to vector<8x8xf32>
    %90 = arith.addf %86, %89 : vector<8x8xf32>
    %91 = arith.truncf %90 : vector<8x8xf32> to vector<8x8xbf16>
    %cst_62 = arith.constant dense<0.000000e+00> : vector<8x8xf32>
    %92 = tpu.matmul %75, %83, %cst_62 {dimension_numbers = #tpu.dot_dimension_numbers<[1], [1], [0], [0], [0, 0, 1, 0], [], []>} : vector<8x8xbf16>, vector<8x8xbf16>, vector<8x8xf32> -> vector<8x8xf32>
    %cst_63 = arith.constant 0.353553385 : f32
    %93 = vector.broadcast %cst_63 : f32 to vector<8x8xf32>
    %94 = arith.mulf %92, %93 : vector<8x8xf32>
    %95 = vector.broadcast %18 : vector<8x1xf32> to vector<8x8xf32>
    %96 = arith.mulf %94, %95 : vector<8x8xf32>
    %cst_64 = arith.constant -1.000000e+32 : f32
    %97 = vector.broadcast %cst_64 : f32 to vector<8x8xf32>
    %98 = arith.select %16, %96, %97 : vector<8x8xi1>, vector<8x8xf32>
    %cst_65 = arith.constant dense<0xFF800000> : vector<8xf32>
    %99 = vector.multi_reduction <maximumf>, %98, %cst_65 [1] : vector<8x8xf32> to vector<8xf32>
    %100 = vector.shape_cast %99 : vector<8xf32> to vector<8x1xf32>
    %101 = vector.broadcast %100 : vector<8x1xf32> to vector<8x8xf32>
    %102 = arith.subf %98, %101 : vector<8x8xf32>
    %103 = math.exp %102 : vector<8x8xf32>
    %cst_66 = arith.constant dense<0.000000e+00> : vector<8xf32>
    %104 = vector.multi_reduction <add>, %103, %cst_66 [1] : vector<8x8xf32> to vector<8xf32>
    %105 = vector.shape_cast %104 : vector<8xf32> to vector<8x1xf32>
    %106 = tpu.reciprocal %105 {approx = true} : vector<8x1xf32> -> vector<8x1xf32>
    %107 = vector.broadcast %106 : vector<8x1xf32> to vector<8x8xf32>
    %108 = arith.mulf %103, %107 : vector<8x8xf32>
    %109 = arith.truncf %108 : vector<8x8xf32> to vector<8x8xbf16>
    %cst_67 = arith.constant dense<0.000000e+00> : vector<8x8xf32>
    %110 = tpu.matmul %109, %91, %cst_67 {dimension_numbers = #tpu.dot_dimension_numbers<[1], [0], [0], [1], [0, 0, 1, 1], [], []>} : vector<8x8xbf16>, vector<8x8xbf16>, vector<8x8xf32> -> vector<8x8xf32>
    %111 = arith.truncf %110 : vector<8x8xf32> to vector<8x8xbf16>
    %c1_68 = arith.constant 1 : index
    %c0_69 = arith.constant 0 : index
    %c0_70 = arith.constant 0 : index
    %112 = vector.load %arg12[%c1_68, %c0_69, %c0_70] : memref<4x8x32xbf16, #tpu.memory_space<vmem>>, vector<1x8x32xbf16>
    %113 = vector.shape_cast %112 : vector<1x8x32xbf16> to vector<8x32xbf16>
    %cst_71 = arith.constant dense<0.000000e+00> : vector<8x32xf32>
    %114 = tpu.matmul %111, %113, %cst_71 {dimension_numbers = #tpu.dot_dimension_numbers<[1], [0], [0], [1], [0, 0, 1, 1], [], []>} : vector<8x8xbf16>, vector<8x32xbf16>, vector<8x32xf32> -> vector<8x32xf32>
    %115 = arith.addf %67, %114 : vector<8x32xf32>
    %c2 = arith.constant 2 : index
    %c0_72 = arith.constant 0 : index
    %c0_73 = arith.constant 0 : index
    %116 = vector.load %arg6[%c2, %c0_72, %c0_73] : memref<4x32x8xbf16, #tpu.memory_space<vmem>>, vector<1x32x8xbf16>
    %117 = vector.shape_cast %116 : vector<1x32x8xbf16> to vector<32x8xbf16>
    %cst_74 = arith.constant dense<0.000000e+00> : vector<8x8xf32>
    %118 = tpu.matmul %3, %117, %cst_74 {dimension_numbers = #tpu.dot_dimension_numbers<[1], [0], [0], [1], [0, 0, 1, 1], [], []>} : vector<8x32xbf16>, vector<32x8xbf16>, vector<8x8xf32> -> vector<8x8xf32>
    %c2_75 = arith.constant 2 : index
    %c0_76 = arith.constant 0 : index
    %c0_77 = arith.constant 0 : index
    %119 = vector.load %arg7[%c2_75, %c0_76, %c0_77] : memref<4x1x8xf32, #tpu.memory_space<vmem>>, vector<1x1x8xf32>
    %120 = vector.shape_cast %119 : vector<1x1x8xf32> to vector<1x8xf32>
    %121 = vector.broadcast %120 : vector<1x8xf32> to vector<8x8xf32>
    %122 = arith.addf %118, %121 : vector<8x8xf32>
    %123 = arith.truncf %122 : vector<8x8xf32> to vector<8x8xbf16>
    %c2_78 = arith.constant 2 : index
    %c0_79 = arith.constant 0 : index
    %c0_80 = arith.constant 0 : index
    %124 = vector.load %arg8[%c2_78, %c0_79, %c0_80] : memref<4x32x8xbf16, #tpu.memory_space<vmem>>, vector<1x32x8xbf16>
    %125 = vector.shape_cast %124 : vector<1x32x8xbf16> to vector<32x8xbf16>
    %cst_81 = arith.constant dense<0.000000e+00> : vector<8x8xf32>
    %126 = tpu.matmul %6, %125, %cst_81 {dimension_numbers = #tpu.dot_dimension_numbers<[1], [0], [0], [1], [0, 0, 1, 1], [], []>} : vector<8x32xbf16>, vector<32x8xbf16>, vector<8x8xf32> -> vector<8x8xf32>
    %c2_82 = arith.constant 2 : index
    %c0_83 = arith.constant 0 : index
    %c0_84 = arith.constant 0 : index
    %127 = vector.load %arg9[%c2_82, %c0_83, %c0_84] : memref<4x1x8xf32, #tpu.memory_space<vmem>>, vector<1x1x8xf32>
    %128 = vector.shape_cast %127 : vector<1x1x8xf32> to vector<1x8xf32>
    %129 = vector.broadcast %128 : vector<1x8xf32> to vector<8x8xf32>
    %130 = arith.addf %126, %129 : vector<8x8xf32>
    %131 = arith.truncf %130 : vector<8x8xf32> to vector<8x8xbf16>
    %c2_85 = arith.constant 2 : index
    %c0_86 = arith.constant 0 : index
    %c0_87 = arith.constant 0 : index
    %132 = vector.load %arg10[%c2_85, %c0_86, %c0_87] : memref<4x32x8xbf16, #tpu.memory_space<vmem>>, vector<1x32x8xbf16>
    %133 = vector.shape_cast %132 : vector<1x32x8xbf16> to vector<32x8xbf16>
    %cst_88 = arith.constant dense<0.000000e+00> : vector<8x8xf32>
    %134 = tpu.matmul %9, %133, %cst_88 {dimension_numbers = #tpu.dot_dimension_numbers<[1], [0], [0], [1], [0, 0, 1, 1], [], []>} : vector<8x32xbf16>, vector<32x8xbf16>, vector<8x8xf32> -> vector<8x8xf32>
    %c2_89 = arith.constant 2 : index
    %c0_90 = arith.constant 0 : index
    %c0_91 = arith.constant 0 : index
    %135 = vector.load %arg11[%c2_89, %c0_90, %c0_91] : memref<4x1x8xf32, #tpu.memory_space<vmem>>, vector<1x1x8xf32>
    %136 = vector.shape_cast %135 : vector<1x1x8xf32> to vector<1x8xf32>
    %137 = vector.broadcast %136 : vector<1x8xf32> to vector<8x8xf32>
    %138 = arith.addf %134, %137 : vector<8x8xf32>
    %139 = arith.truncf %138 : vector<8x8xf32> to vector<8x8xbf16>
    %cst_92 = arith.constant dense<0.000000e+00> : vector<8x8xf32>
    %140 = tpu.matmul %123, %131, %cst_92 {dimension_numbers = #tpu.dot_dimension_numbers<[1], [1], [0], [0], [0, 0, 1, 0], [], []>} : vector<8x8xbf16>, vector<8x8xbf16>, vector<8x8xf32> -> vector<8x8xf32>
    %cst_93 = arith.constant 0.353553385 : f32
    %141 = vector.broadcast %cst_93 : f32 to vector<8x8xf32>
    %142 = arith.mulf %140, %141 : vector<8x8xf32>
    %143 = vector.broadcast %18 : vector<8x1xf32> to vector<8x8xf32>
    %144 = arith.mulf %142, %143 : vector<8x8xf32>
    %cst_94 = arith.constant -1.000000e+32 : f32
    %145 = vector.broadcast %cst_94 : f32 to vector<8x8xf32>
    %146 = arith.select %16, %144, %145 : vector<8x8xi1>, vector<8x8xf32>
    %cst_95 = arith.constant dense<0xFF800000> : vector<8xf32>
    %147 = vector.multi_reduction <maximumf>, %146, %cst_95 [1] : vector<8x8xf32> to vector<8xf32>
    %148 = vector.shape_cast %147 : vector<8xf32> to vector<8x1xf32>
    %149 = vector.broadcast %148 : vector<8x1xf32> to vector<8x8xf32>
    %150 = arith.subf %146, %149 : vector<8x8xf32>
    %151 = math.exp %150 : vector<8x8xf32>
    %cst_96 = arith.constant dense<0.000000e+00> : vector<8xf32>
    %152 = vector.multi_reduction <add>, %151, %cst_96 [1] : vector<8x8xf32> to vector<8xf32>
    %153 = vector.shape_cast %152 : vector<8xf32> to vector<8x1xf32>
    %154 = tpu.reciprocal %153 {approx = true} : vector<8x1xf32> -> vector<8x1xf32>
    %155 = vector.broadcast %154 : vector<8x1xf32> to vector<8x8xf32>
    %156 = arith.mulf %151, %155 : vector<8x8xf32>
    %157 = arith.truncf %156 : vector<8x8xf32> to vector<8x8xbf16>
    %cst_97 = arith.constant dense<0.000000e+00> : vector<8x8xf32>
    %158 = tpu.matmul %157, %139, %cst_97 {dimension_numbers = #tpu.dot_dimension_numbers<[1], [0], [0], [1], [0, 0, 1, 1], [], []>} : vector<8x8xbf16>, vector<8x8xbf16>, vector<8x8xf32> -> vector<8x8xf32>
    %159 = arith.truncf %158 : vector<8x8xf32> to vector<8x8xbf16>
    %c2_98 = arith.constant 2 : index
    %c0_99 = arith.constant 0 : index
    %c0_100 = arith.constant 0 : index
    %160 = vector.load %arg12[%c2_98, %c0_99, %c0_100] : memref<4x8x32xbf16, #tpu.memory_space<vmem>>, vector<1x8x32xbf16>
    %161 = vector.shape_cast %160 : vector<1x8x32xbf16> to vector<8x32xbf16>
    %cst_101 = arith.constant dense<0.000000e+00> : vector<8x32xf32>
    %162 = tpu.matmul %159, %161, %cst_101 {dimension_numbers = #tpu.dot_dimension_numbers<[1], [0], [0], [1], [0, 0, 1, 1], [], []>} : vector<8x8xbf16>, vector<8x32xbf16>, vector<8x32xf32> -> vector<8x32xf32>
    %163 = arith.addf %115, %162 : vector<8x32xf32>
    %c3 = arith.constant 3 : index
    %c0_102 = arith.constant 0 : index
    %c0_103 = arith.constant 0 : index
    %164 = vector.load %arg6[%c3, %c0_102, %c0_103] : memref<4x32x8xbf16, #tpu.memory_space<vmem>>, vector<1x32x8xbf16>
    %165 = vector.shape_cast %164 : vector<1x32x8xbf16> to vector<32x8xbf16>
    %cst_104 = arith.constant dense<0.000000e+00> : vector<8x8xf32>
    %166 = tpu.matmul %3, %165, %cst_104 {dimension_numbers = #tpu.dot_dimension_numbers<[1], [0], [0], [1], [0, 0, 1, 1], [], []>} : vector<8x32xbf16>, vector<32x8xbf16>, vector<8x8xf32> -> vector<8x8xf32>
    %c3_105 = arith.constant 3 : index
    %c0_106 = arith.constant 0 : index
    %c0_107 = arith.constant 0 : index
    %167 = vector.load %arg7[%c3_105, %c0_106, %c0_107] : memref<4x1x8xf32, #tpu.memory_space<vmem>>, vector<1x1x8xf32>
    %168 = vector.shape_cast %167 : vector<1x1x8xf32> to vector<1x8xf32>
    %169 = vector.broadcast %168 : vector<1x8xf32> to vector<8x8xf32>
    %170 = arith.addf %166, %169 : vector<8x8xf32>
    %171 = arith.truncf %170 : vector<8x8xf32> to vector<8x8xbf16>
    %c3_108 = arith.constant 3 : index
    %c0_109 = arith.constant 0 : index
    %c0_110 = arith.constant 0 : index
    %172 = vector.load %arg8[%c3_108, %c0_109, %c0_110] : memref<4x32x8xbf16, #tpu.memory_space<vmem>>, vector<1x32x8xbf16>
    %173 = vector.shape_cast %172 : vector<1x32x8xbf16> to vector<32x8xbf16>
    %cst_111 = arith.constant dense<0.000000e+00> : vector<8x8xf32>
    %174 = tpu.matmul %6, %173, %cst_111 {dimension_numbers = #tpu.dot_dimension_numbers<[1], [0], [0], [1], [0, 0, 1, 1], [], []>} : vector<8x32xbf16>, vector<32x8xbf16>, vector<8x8xf32> -> vector<8x8xf32>
    %c3_112 = arith.constant 3 : index
    %c0_113 = arith.constant 0 : index
    %c0_114 = arith.constant 0 : index
    %175 = vector.load %arg9[%c3_112, %c0_113, %c0_114] : memref<4x1x8xf32, #tpu.memory_space<vmem>>, vector<1x1x8xf32>
    %176 = vector.shape_cast %175 : vector<1x1x8xf32> to vector<1x8xf32>
    %177 = vector.broadcast %176 : vector<1x8xf32> to vector<8x8xf32>
    %178 = arith.addf %174, %177 : vector<8x8xf32>
    %179 = arith.truncf %178 : vector<8x8xf32> to vector<8x8xbf16>
    %c3_115 = arith.constant 3 : index
    %c0_116 = arith.constant 0 : index
    %c0_117 = arith.constant 0 : index
    %180 = vector.load %arg10[%c3_115, %c0_116, %c0_117] : memref<4x32x8xbf16, #tpu.memory_space<vmem>>, vector<1x32x8xbf16>
    %181 = vector.shape_cast %180 : vector<1x32x8xbf16> to vector<32x8xbf16>
    %cst_118 = arith.constant dense<0.000000e+00> : vector<8x8xf32>
    %182 = tpu.matmul %9, %181, %cst_118 {dimension_numbers = #tpu.dot_dimension_numbers<[1], [0], [0], [1], [0, 0, 1, 1], [], []>} : vector<8x32xbf16>, vector<32x8xbf16>, vector<8x8xf32> -> vector<8x8xf32>
    %c3_119 = arith.constant 3 : index
    %c0_120 = arith.constant 0 : index
    %c0_121 = arith.constant 0 : index
    %183 = vector.load %arg11[%c3_119, %c0_120, %c0_121] : memref<4x1x8xf32, #tpu.memory_space<vmem>>, vector<1x1x8xf32>
    %184 = vector.shape_cast %183 : vector<1x1x8xf32> to vector<1x8xf32>
    %185 = vector.broadcast %184 : vector<1x8xf32> to vector<8x8xf32>
    %186 = arith.addf %182, %185 : vector<8x8xf32>
    %187 = arith.truncf %186 : vector<8x8xf32> to vector<8x8xbf16>
    %cst_122 = arith.constant dense<0.000000e+00> : vector<8x8xf32>
    %188 = tpu.matmul %171, %179, %cst_122 {dimension_numbers = #tpu.dot_dimension_numbers<[1], [1], [0], [0], [0, 0, 1, 0], [], []>} : vector<8x8xbf16>, vector<8x8xbf16>, vector<8x8xf32> -> vector<8x8xf32>
    %cst_123 = arith.constant 0.353553385 : f32
    %189 = vector.broadcast %cst_123 : f32 to vector<8x8xf32>
    %190 = arith.mulf %188, %189 : vector<8x8xf32>
    %191 = vector.broadcast %18 : vector<8x1xf32> to vector<8x8xf32>
    %192 = arith.mulf %190, %191 : vector<8x8xf32>
    %cst_124 = arith.constant -1.000000e+32 : f32
    %193 = vector.broadcast %cst_124 : f32 to vector<8x8xf32>
    %194 = arith.select %16, %192, %193 : vector<8x8xi1>, vector<8x8xf32>
    %cst_125 = arith.constant dense<0xFF800000> : vector<8xf32>
    %195 = vector.multi_reduction <maximumf>, %194, %cst_125 [1] : vector<8x8xf32> to vector<8xf32>
    %196 = vector.shape_cast %195 : vector<8xf32> to vector<8x1xf32>
    %197 = vector.broadcast %196 : vector<8x1xf32> to vector<8x8xf32>
    %198 = arith.subf %194, %197 : vector<8x8xf32>
    %199 = math.exp %198 : vector<8x8xf32>
    %cst_126 = arith.constant dense<0.000000e+00> : vector<8xf32>
    %200 = vector.multi_reduction <add>, %199, %cst_126 [1] : vector<8x8xf32> to vector<8xf32>
    %201 = vector.shape_cast %200 : vector<8xf32> to vector<8x1xf32>
    %202 = tpu.reciprocal %201 {approx = true} : vector<8x1xf32> -> vector<8x1xf32>
    %203 = vector.broadcast %202 : vector<8x1xf32> to vector<8x8xf32>
    %204 = arith.mulf %199, %203 : vector<8x8xf32>
    %205 = arith.truncf %204 : vector<8x8xf32> to vector<8x8xbf16>
    %cst_127 = arith.constant dense<0.000000e+00> : vector<8x8xf32>
    %206 = tpu.matmul %205, %187, %cst_127 {dimension_numbers = #tpu.dot_dimension_numbers<[1], [0], [0], [1], [0, 0, 1, 1], [], []>} : vector<8x8xbf16>, vector<8x8xbf16>, vector<8x8xf32> -> vector<8x8xf32>
    %207 = arith.truncf %206 : vector<8x8xf32> to vector<8x8xbf16>
    %c3_128 = arith.constant 3 : index
    %c0_129 = arith.constant 0 : index
    %c0_130 = arith.constant 0 : index
    %208 = vector.load %arg12[%c3_128, %c0_129, %c0_130] : memref<4x8x32xbf16, #tpu.memory_space<vmem>>, vector<1x8x32xbf16>
    %209 = vector.shape_cast %208 : vector<1x8x32xbf16> to vector<8x32xbf16>
    %cst_131 = arith.constant dense<0.000000e+00> : vector<8x32xf32>
    %210 = tpu.matmul %207, %209, %cst_131 {dimension_numbers = #tpu.dot_dimension_numbers<[1], [0], [0], [1], [0, 0, 1, 1], [], []>} : vector<8x8xbf16>, vector<8x32xbf16>, vector<8x32xf32> -> vector<8x32xf32>
    %211 = arith.addf %163, %210 : vector<8x32xf32>
    %212 = tpu.iota {dimensions = array<i32: 0>} : vector<8x1xi32>
    %213 = vector.broadcast %0 : i32 to vector<8x1xi32>
    %214 = arith.addi %212, %213 : vector<8x1xi32>
    %c0_i32_132 = arith.constant 0 : i32
    %215 = vector.broadcast %c0_i32_132 : i32 to vector<8x1xi32>
    %216 = arith.cmpi eq, %214, %215 : vector<8x1xi32>
    %cst_133 = arith.constant 0.000000e+00 : f32
    %217 = vector.shape_cast %216 : vector<8x1xi1> to vector<8x1xi1>
    %218 = vector.broadcast %217 : vector<8x1xi1> to vector<8x32xi1>
    %219 = vector.broadcast %cst_133 : f32 to vector<8x32xf32>
    %220 = arith.select %218, %219, %211 : vector<8x32xi1>, vector<8x32xf32>
    %c0_134 = arith.constant 0 : index
    %c0_135 = arith.constant 0 : index
    %221 = vector.load %arg13[%c0_134, %c0_135] : memref<1x32xf32, #tpu.memory_space<vmem>>, vector<1x32xf32>
    %222 = vector.broadcast %221 : vector<1x32xf32> to vector<8x32xf32>
    %223 = arith.addf %220, %222 : vector<8x32xf32>
    %c0_136 = arith.constant 0 : index
    %c0_137 = arith.constant 0 : index
    %c0_138 = arith.constant 0 : index
    %224 = vector.load %arg14[%c0_136, %c0_137, %c0_138] : memref<1x8x32xf32, #tpu.memory_space<vmem>>, vector<1x8x32xf32>
    %225 = vector.shape_cast %224 : vector<1x8x32xf32> to vector<8x32xf32>
    %226 = vector.shape_cast %223 : vector<8x32xf32> to vector<1x8x32xf32>
    tpu.vector_store %arg14[%c0_136, %c0_137, %c0_138], %226 {strides = array<i32>} : memref<1x8x32xf32, #tpu.memory_space<vmem>>, vector<1x8x32xf32>,
    return
  }
  func.func @transform_0(%arg0: i32, %arg1: i32) -> (i32, i32, i32) {
    %c0_i32 = arith.constant 0 : i32
    %c0_i32_0 = arith.constant 0 : i32
    return %arg0, %arg1, %c0_i32 : i32, i32, i32
  }
  func.func @transform_1(%arg0: i32, %arg1: i32) -> (i32, i32, i32) {
    %c0_i32 = arith.constant 0 : i32
    %c0_i32_0 = arith.constant 0 : i32
    %c0_i32_1 = arith.constant 0 : i32
    return %arg0, %c0_i32, %c0_i32_0 : i32, i32, i32
  }
  func.func @transform_2(%arg0: i32, %arg1: i32) -> (i32, i32, i32) {
    %c0_i32 = arith.constant 0 : i32
    %c0_i32_0 = arith.constant 0 : i32
    %c0_i32_1 = arith.constant 0 : i32
    return %arg0, %c0_i32, %c0_i32_0 : i32, i32, i32
  }
  func.func @transform_3(%arg0: i32, %arg1: i32) -> (i32, i32, i32) {
    %c0_i32 = arith.constant 0 : i32
    %c0_i32_0 = arith.constant 0 : i32
    return %arg0, %arg1, %c0_i32 : i32, i32, i32
  }
  func.func @transform_4(%arg0: i32, %arg1: i32) -> (i32, i32, i32) {
    %c0_i32 = arith.constant 0 : i32
    %c0_i32_0 = arith.constant 0 : i32
    %c0_i32_1 = arith.constant 0 : i32
    %c0_i32_2 = arith.constant 0 : i32
    return %c0_i32, %c0_i32_0, %c0_i32_1 : i32, i32, i32
  }
  func.func @transform_5(%arg0: i32, %arg1: i32) -> (i32, i32, i32) {
    %c0_i32 = arith.constant 0 : i32
    %c0_i32_0 = arith.constant 0 : i32
    %c0_i32_1 = arith.constant 0 : i32
    %c0_i32_2 = arith.constant 0 : i32
    return %c0_i32, %c0_i32_0, %c0_i32_1 : i32, i32, i32
  }
  func.func @transform_6(%arg0: i32, %arg1: i32) -> (i32, i32, i32) {
    %c0_i32 = arith.constant 0 : i32
    %c0_i32_0 = arith.constant 0 : i32
    %c0_i32_1 = arith.constant 0 : i32
    %c0_i32_2 = arith.constant 0 : i32
    return %c0_i32, %c0_i32_0, %c0_i32_1 : i32, i32, i32
  }
  func.func @transform_7(%arg0: i32, %arg1: i32) -> (i32, i32, i32) {
    %c0_i32 = arith.constant 0 : i32
    %c0_i32_0 = arith.constant 0 : i32
    %c0_i32_1 = arith.constant 0 : i32
    %c0_i32_2 = arith.constant 0 : i32
    return %c0_i32, %c0_i32_0, %c0_i32_1 : i32, i32, i32
  }
  func.func @transform_8(%arg0: i32, %arg1: i32) -> (i32, i32, i32) {
    %c0_i32 = arith.constant 0 : i32
    %c0_i32_0 = arith.constant 0 : i32
    %c0_i32_1 = arith.constant 0 : i32
    %c0_i32_2 = arith.constant 0 : i32
    return %c0_i32, %c0_i32_0, %c0_i32_1 : i32, i32, i32
  }
  func.func @transform_9(%arg0: i32, %arg1: i32) -> (i32, i32, i32) {
    %c0_i32 = arith.constant 0 : i32
    %c0_i32_0 = arith.constant 0 : i32
    %c0_i32_1 = arith.constant 0 : i32
    %c0_i32_2 = arith.constant 0 : i32
    return %c0_i32, %c0_i32_0, %c0_i32_1 : i32, i32, i32
  }
  func.func @transform_10(%arg0: i32, %arg1: i32) -> (i32, i32, i32) {
    %c0_i32 = arith.constant 0 : i32
    %c0_i32_0 = arith.constant 0 : i32
    %c0_i32_1 = arith.constant 0 : i32
    %c0_i32_2 = arith.constant 0 : i32
    return %c0_i32, %c0_i32_0, %c0_i32_1 : i32, i32, i32
  }
  func.func @transform_11(%arg0: i32, %arg1: i32) -> (i32, i32) {
    %c0_i32 = arith.constant 0 : i32
    %c0_i32_0 = arith.constant 0 : i32
    %c0_i32_1 = arith.constant 0 : i32
    return %c0_i32, %c0_i32_0 : i32, i32
  }
  func.func @transform_12(%arg0: i32, %arg1: i32) -> (i32, i32, i32) {
    %c0_i32 = arith.constant 0 : i32
    %c0_i32_0 = arith.constant 0 : i32
    return %arg0, %arg1, %c0_i32 : i32, i32, i32
  }
}

</mosaic_0001>

<bundles_post_ra>
// kernel: tpu_custom_call.1
= control target key start
LH: loop header
LB: loop body
LE: loop exit
PB: predicated region body
PF: predicated region fallthrough
CT: control target
= control target key end

     0   :  { %s4160_s0 = inlined_call_operand.hbm [shape: f32[2,8,32], index: 0, kind: input, shape index: {}]   ;;  %s4161_s1 = inlined_call_operand.hbm [shape: f32[2,8,32], index: 1, kind: input, shape index: {}]   ;;  %s4162_s2 = inlined_call_operand.hbm [shape: f32[2,8,32], index: 2, kind: input, shape index: {}]   ;;  %s4163_s3 = inlined_call_operand.hbm [shape: f32[2,8,1], index: 3, kind: input, shape index: {}]   ;;  %s4164_s4 = inlined_call_operand.hbm [shape: bf16[4,32,8], index: 4, kind: input, shape index: {}]   ;;  %s4165_s5 = inlined_call_operand.hbm [shape: f32[4,1,8], index: 5, kind: input, shape index: {}]   ;;  %s4166_s6 = inlined_call_operand.hbm [shape: bf16[4,32,8], index: 6, kind: input, shape index: {}]   ;;  %s4167_s7 = inlined_call_operand.hbm [shape: f32[4,1,8], index: 7, kind: input, shape index: {}]   ;;  %s4168_s8 = inlined_call_operand.hbm [shape: bf16[4,32,8], index: 8, kind: input, shape index: {}]   ;;  %s4169_s9 = inlined_call_operand.hbm [shape: f32[4,1,8], index: 9, kind: input, shape index: {}]   ;;  %s4170_s10 = inlined_call_operand.hbm [shape: bf16[4,8,32], index: 10, kind: input, shape index: {}]   ;;  %s4171_s11 = inlined_call_operand.hbm [shape: f32[1,32], index: 11, kind: input, shape index: {}]   ;;  %s4172_s12 = inlined_call_operand.hbm [shape: f32[2,8,32], index: 12, kind: output, shape index: {}]  }
   0x1   :  { %4199 = sst [smem:[#allocation39_spill]] %s4161_s1 }
   0x2   :  { %4200 = sst [smem:[#allocation40_spill]] %s4162_s2 }
   0x3   :  { %4201 = sst [smem:[#allocation41_spill]] %s4163_s3 }
   0x4   :  { %4202 = sst [smem:[#allocation42_spill]] %s4164_s4 }
   0x5   :  { %4203 = sst [smem:[#allocation43_spill]] %s4165_s5 }
   0x6   :  { %4204 = sst [smem:[#allocation44_spill]] %s4166_s6 }
   0x7   :  { %4205 = sst [smem:[#allocation45_spill]] %s4167_s7 }
   0x8   :  { %4206 = sst [smem:[#allocation46_spill]] %s4169_s9 }
   0x9   :  { %4207 = sst [smem:[#allocation47_spill]] %s4172_s12 }
   0xa   :  { %17 = vsyncpa [#allocation3], 0 }
   0xb   :  { %19 = vsyncpa [#allocation3 + $0x1], 0 }
   0xc   :  { %20 = vsyncpa [#allocation6], 0 }
   0xd   :  { %22 = vsyncpa [#allocation6 + $0x1], 0 }
   0xe   :  { %23 = vsyncpa [#allocation9], 0 }
   0xf   :  { %25 = vsyncpa [#allocation9 + $0x1], 0 }
  0x10   :  { %26 = vsyncpa [#allocation12], 0 }
  0x11   :  { %27 = vsyncpa [#allocation15], 0 }
  0x12   :  { %28 = vsyncpa [#allocation18], 0 }
  0x13   :  { %29 = vsyncpa [#allocation21], 0 }
  0x14   :  { %30 = vsyncpa [#allocation4], 0 }
  0x15   :  { %32 = vsyncpa [#allocation4 + $0x1], 0  ;;  %s3452_s21 = smov 0   ;;  %s3454_s22 = smov 0  }
  0x16   :  { %s3456_s23 = smov 0   ;;  %s3458_s24 = smov 0  }
  0x17   :  { %s3460_s25 = smov 0   ;;  %s3462_s26 = smov 0  }
  0x18 LB: > { %4208 = sst [smem:[#allocation32_spill]] %s3345_s21  ;;  %s3483_s27 = sadd.s32 4294967295, %s3365_s26   ;;  %s3365_s26 = sphi %s3462_s26, %s38_s26   ;;  %s3361_s25 = sphi %s3460_s25, %s4266_s25   ;;  %s3357_s24 = sphi %s3458_s24, %s4265_s24   ;;  %s3353_s23 = sphi %s3456_s23, %s4269_s23   ;;  %s3349_s22 = sphi %s3454_s22, %s4268_s22   ;;  %s3345_s21 = sphi %s3452_s21, %s4267_s21  }
  0x19   : > { %4209 = sst [smem:[#allocation33_spill]] %s3357_s24  ;;  %p2368_p0 = scmp.ge.s32.totalorder %s3365_s26, 1 }
  0x1a   : > { %4210 = sst [smem:[#allocation34_spill]] %s3361_s25  ;;  %p4181_p1 = scmp.eq.s32.totalorder %s3483_s27, 0 }
  0x1b   : > { %p359_p2 = scmp.lt.s32.totalorder %s3365_s26, 3  ;;  %s3367_s29 = smov [#allocation10]  }
  0x1c   : > { %s371_s30 = sshll.u32 %s3367_s29, 4  ;;  %s3368_s14 = smov [#allocation11]   ;;  %s3492_s30 = int_to_ptr.vmem [resolvable:$true] %s371_s30 }
  0x1d   : > { %p3488_p3 = pnand %p2368_p0, %p359_p2  ;;  %s384_s15 = sshll.u32 %s3368_s14, 4  ;;  %s3503_s15 = int_to_ptr.vmem [resolvable:$true] %s384_s15 }
  0x1e   : > { %s4214_s4 = sld [smem:[#allocation42_spill]] }
  0x1f   : > { %s4211_s28 = scalar_select %p3488_p3, 1, 0 }
  0x20   : > { %p2747_p4 = pneg %p3488_p3 }
  0x21   : > { %4212 = sst [smem:[#allocation35_spill]] %s4211_s28 }
  0x22   : > { %p3499_p6 = pnand %p2747_p4, %p4181_p1 }
  0x24   : > { %s4213_s13 = scalar_select %p3499_p6, 1, 0 }
  0x25   : > { %s2911_s18 = scalar_lea.hbm %s4214_s4, 1024  ;;  %p3513_p8 = pneg %p3499_p6 }
  0x26   : > { %p2912_p7 = scmp.ne.s32.totalorder %s4214_s4, %s2911_s18  ;;  %p2918_p11 = scmp.lt.u32.totalorder %s2911_s18, %s4214_s4 }
  0x27   : > { %s4215_s29 = scalar_select %p3513_p8, 1, 0 }
  0x28   : > { %p2914_p9 = pnand %p3513_p8, %p2912_p7 }
  0x2a   : > { %p2915_p10 = pneg %p2914_p9 }
  0x2c   : > { %p2920_p12 = pnand %p2918_p11, %p2915_p10 }
  0x2e   : > { %2923 = shalt.err (!%p2920_p12)
}
  0x2f   : > { %s2924_s16 = scalar_lea.vmem %s3492_s30, 1024  ;;  %p2932_p4 = scmp.lt.s32.totalorder %s3492_s30, %s3492_s30 }
  0x30   : > { %p2925_p13 = scmp.ne.s32.totalorder %s3492_s30, %s2924_s16  ;;  %p2933_p5 = scmp.lt.s32.totalorder %s2924_s16, %s2924_s16 }
  0x32   : > { %p2927_p0 = pnand %p2925_p13, %p3513_p8  ;;  %p2934_p7 = por %p2933_p5, %p2932_p4 }
  0x34   : > { %p2928_p2 = pneg %p2927_p0 }
  0x36   : > { %p2935_p9 = pnand %p2934_p7, %p2928_p2 }
  0x38   : > { %2938 = shalt.err (!%p2935_p9)
}
  0x39   : > { %s4177_s17 = smov 64   ;;  %s4179_s12 = smov 4  }
  0x3a   : > { %2750 = dma.hbm_to_vmem [thread:$0]  (!%p3499_p6), %s4214_s4, 1024, %s3492_s30, [#allocation9], %s4177_s17, %s4177_s17, %s4179_s12  }
  0x3b   : > { %s4216_s5 = sld [smem:[#allocation43_spill]] }
  0x41   : > { %s2939_s16 = scalar_lea.hbm %s4216_s5, 64 }
  0x42   : > { %p2940_p5 = scmp.ne.s32.totalorder %s4216_s5, %s2939_s16  ;;  %p2946_p12 = scmp.lt.u32.totalorder %s2939_s16, %s4216_s5 }
  0x44   : > { %p2942_p10 = pnand %p2940_p5, %p3513_p8 }
  0x46   : > { %p2943_p11 = pneg %p2942_p10 }
  0x48   : > { %p2948_p13 = pnand %p2946_p12, %p2943_p11 }
  0x4a   : > { %2951 = shalt.err (!%p2948_p13)
}
  0x4b   : > { %s2952_s30 = scalar_lea.vmem %s3503_s15, 64  ;;  %p2960_p7 = scmp.lt.s32.totalorder %s3503_s15, %s3503_s15 }
  0x4c   : > { %p2953_p0 = scmp.ne.s32.totalorder %s3503_s15, %s2952_s30  ;;  %p2961_p9 = scmp.lt.s32.totalorder %s2952_s30, %s2952_s30 }
  0x4e   : > { %p2955_p2 = pnand %p2953_p0, %p3513_p8  ;;  %p2962_p5 = por %p2961_p9, %p2960_p7 }
  0x50   : > { %p2956_p4 = pneg %p2955_p2 }
  0x52   : > { %p2963_p10 = pnand %p2962_p5, %p2956_p4 }
  0x54   : > { %2966 = shalt.err (!%p2963_p10)
}
  0x55   : > { %s3371_s24 = smov 16   ;;  %s3372_s2 = smov 1  }
  0x56   : > { %2753 = dma.hbm_to_vmem [thread:$0]  (!%p3499_p6), %s4216_s5, 64, %s3503_s15, [#allocation12], %s3371_s24, %s3371_s24, %s3372_s2  }
  0x57   : > { %s3373_s18 = smov [#allocation14]   ;;  %s3374_s20 = smov [#allocation17]  }
  0x58   : > { %s410_s19 = sshll.u32 %s3373_s18, 4  ;;  %s436_s14 = sshll.u32 %s3374_s20, 4  ;;  %s411_s19 = int_to_ptr.vmem [resolvable:$true] %s410_s19  ;;  %s3563_s14 = int_to_ptr.vmem [resolvable:$true] %s436_s14 }
  0x59   : > { %s4217_s7 = sld [smem:[#allocation45_spill]] }
  0x5f   : > { %s2967_s17 = scalar_lea.hbm %s4217_s7, 64 }
  0x60   : > { %p2968_p11 = scmp.ne.s32.totalorder %s4217_s7, %s2967_s17  ;;  %p2974_p0 = scmp.lt.u32.totalorder %s2967_s17, %s4217_s7 }
  0x62   : > { %p2970_p12 = pnand %p2968_p11, %p3513_p8 }
  0x64   : > { %p2971_p13 = pneg %p2970_p12 }
  0x66   : > { %p2976_p2 = pnand %p2974_p0, %p2971_p13 }
  0x68   : > { %2979 = shalt.err (!%p2976_p2)
}
  0x69   : > { %s2980_s28 = scalar_lea.vmem %s411_s19, 64  ;;  %p2988_p5 = scmp.lt.s32.totalorder %s411_s19, %s411_s19 }
  0x6a   : > { %p2981_p4 = scmp.ne.s32.totalorder %s411_s19, %s2980_s28  ;;  %p2989_p10 = scmp.lt.s32.totalorder %s2980_s28, %s2980_s28 }
  0x6c   : > { %p2983_p7 = pnand %p2981_p4, %p3513_p8  ;;  %p2990_p1 = por %p2989_p10, %p2988_p5 }
  0x6e   : > { %p2984_p9 = pneg %p2983_p7 }
  0x70   : > { %p2991_p3 = pnand %p2990_p1, %p2984_p9 }
  0x72   : > { %2994 = shalt.err (!%p2991_p3)
}
  0x73   : > { %2759 = dma.hbm_to_vmem [thread:$0]  (!%p3499_p6), %s4217_s7, 64, %s411_s19, [#allocation15], %s3371_s24, %s3371_s24, %s3372_s2  }
  0x74   : > { %s4218_s9 = sld [smem:[#allocation46_spill]] }
  0x7a   : > { %s2995_s20 = scalar_lea.hbm %s4218_s9, 64 }
  0x7b   : > { %p2996_p11 = scmp.ne.s32.totalorder %s4218_s9, %s2995_s20  ;;  %p3002_p12 = scmp.lt.u32.totalorder %s2995_s20, %s4218_s9 }
  0x7d   : > { %p2998_p1 = pnand %p2996_p11, %p3513_p8 }
  0x7f   : > { %p2999_p3 = pneg %p2998_p1 }
  0x81   : > { %p3004_p13 = pnand %p3002_p12, %p2999_p3 }
  0x83   : > { %3007 = shalt.err (!%p3004_p13)
}
  0x84   : > { %s3008_s19 = scalar_lea.vmem %s3563_s14, 64  ;;  %p3016_p7 = scmp.lt.s32.totalorder %s3563_s14, %s3563_s14 }
  0x85   : > { %p3009_p0 = scmp.ne.s32.totalorder %s3563_s14, %s3008_s19  ;;  %p3017_p9 = scmp.lt.s32.totalorder %s3008_s19, %s3008_s19 }
  0x87   : > { %p3011_p2 = pnand %p3009_p0, %p3513_p8  ;;  %p3018_p5 = por %p3017_p9, %p3016_p7 }
  0x89   : > { %p3012_p4 = pneg %p3011_p2 }
  0x8b   : > { %p3019_p10 = pnand %p3018_p5, %p3012_p4 }
  0x8d   : > { %3022 = shalt.err (!%p3019_p10)
}
  0x8e   : > { %2765 = dma.hbm_to_vmem [thread:$0]  (!%p3499_p6), %s4218_s9, 64, %s3563_s14, [#allocation18], %s3371_s24, %s3371_s24, %s3372_s2  }
  0x8f   : > { %s2367_s17 = sadd.s32 4294967294, %s3365_s26   ;;  %s50_s12 = sadd.s32 1, %s3361_s25 }
  0x90   : > { %p52_p11 = scmp.ge.s32.totalorder %s50_s12, 2  ;;  %s59_s18 = sadd.s32 1, %s3353_s23 }
  0x91   : > { %p66_p1 = scmp.ne.s32.totalorder %s3353_s23, %s3349_s22  ;;  %p67_p3 = scmp.eq.s32.totalorder %s3365_s26, 0 }
  0x92   : > { %s4271_s12 = smov (%p52_p11, %s50_s12), 0  ;;  %p72_p13 = scmp.ne.s32.totalorder %s3349_s22, %s3345_s21 }
  0x93   : > { %4219 = sst [smem:[#allocation36_spill]] %s4271_s12  ;;  %p3620_p12 = por %p67_p3, %p66_p1 }
  0x94   : > { %s54_s24 = ssub.s32 %s3361_s25, %s4271_s12  ;;  %p346_p0 = scmp.eq.s32.totalorder %s3483_s27, 1 }
  0x95   : > { %p57_p2 = scmp.eq.s32.totalorder %s54_s24, 0  ;;  %p4221_p4 = scmp.eq.s32.totalorder %s3483_s27, 0 }
  0x96   : > { %p3635_p9 = por %p346_p0, %p66_p1  ;;  %p352_p5 = scmp.eq.s32.totalorder %s2367_s17, 1 }
  0x97   : > { %p3631_p7 = por %p4221_p4, %p72_p13  ;;  %p2797_p11 = scmp.lt.s32.totalorder %s3365_s26, 2 }
  0x98   : > { %s4223_s14 = scalar_select %p3635_p9, 1, 0 }
  0x99   : > { %s4222_s2 = scalar_select %p3631_p7, 1, 0 }
  0x9a   : > { %s3640_s16 = scalar_select %p57_p2, %s3353_s23, %s59_s18  }
  0x9b   : > { %p3642_p10 = por %p352_p5, %p72_p13  ;;  %s4183_s3 = sand.u32 1, %s3353_s23  }
  0x9c   : > { %4224 = sst [smem:[#allocation37_spill]] %s3640_s16  ;;  %s3649_s15 = sshll.u32 %s3361_s25, 7 }
  0x9d   : > { %s4225_s30 = scalar_select %p3642_p10, 1, 0 }
  0x9e   : > { %s3653_s19 = sshll.u32 %s4183_s3, 3  ;;  %p3657_p1 = pnand %p2797_p11, %p3620_p12 }
  0x9f   : > { %4226 = sst [smem:[#allocation38_spill]] %s4225_s30  ;;  %s4187_s4 = sand.u32 1, %s3365_s26  }
  0xa0   : > { %s4227_s28 = scalar_select %p3657_p1, 1, 0 }
  0xa1   : > { %s4228_s1 = sld [smem:[#allocation39_spill]]  ;;  %s497_s5 = scalar_lea.vmem [#allocation5], %s3653_s19 }
  0xa2   : > { %s504_s3 = sshll.u32 %s497_s5, 4  ;;  %s3673_s20 = scalar_lea.sflag [#allocation6], %s4187_s4  ;;  %s3669_s3 = int_to_ptr.vmem [resolvable:$true] %s504_s3 }
  0xa3   : > { %p3679_p12 = pneg %p3657_p1 }
  0xa5   : > { %s4229_s9 = scalar_select %p3679_p12, 1, 0 }
  0xa7   : > { %s3666_s24 = scalar_lea.hbm %s4228_s1, %s3649_s15  ;;  %s3028_s5 = scalar_lea.hbm %s4228_s1, 256 }
  0xa8   : > { %s3023_s7 = scalar_lea.hbm %s3666_s24, 128  ;;  %p3029_p2 = scmp.lt.u32.totalorder %s3666_s24, %s4228_s1 }
  0xa9   : > { %p3024_p3 = scmp.ne.s32.totalorder %s3666_s24, %s3023_s7  ;;  %p3030_p4 = scmp.lt.u32.totalorder %s3028_s5, %s3023_s7 }
  0xaa   : > { %p3032_p11 = scmp.lt.u32.totalorder %s3023_s7, %s3666_s24 }
  0xab   : > { %p3026_p13 = pnand %p3679_p12, %p3024_p3  ;;  %p3031_p5 = por %p3030_p4, %p3029_p2 }
  0xad   : > { %p3027_p0 = pneg %p3026_p13  ;;  %p3033_p10 = por %p3032_p11, %p3031_p5 }
  0xaf   : > { %p3034_p9 = pnand %p3033_p10, %p3027_p0 }
  0xb1   : > { %3037 = shalt.err (!%p3034_p9)
}
  0xb2   : > { %s3038_s4 = scalar_lea.vmem %s3669_s3, 128  ;;  %s3375_s17 = smov [#allocation5]  }
  0xb3   : > { %p3039_p3 = scmp.ne.s32.totalorder %s3669_s3, %s3038_s4  ;;  %s3043_s18 = sshll.u32 %s3375_s17, 4  ;;  %s3044_s18 = int_to_ptr.vmem [resolvable:$false] %s3043_s18 }
  0xb4   : > { %s3045_s25 = scalar_lea.vmem %s3044_s18, 256  ;;  %p3046_p6 = scmp.lt.s32.totalorder %s3669_s3, %s3044_s18 }
  0xb5   : > { %p3041_p13 = pnand %p3039_p3, %p3679_p12  ;;  %p3047_p8 = scmp.lt.s32.totalorder %s3045_s25, %s3038_s4 }
  0xb7   : > { %p3042_p7 = pneg %p3041_p13  ;;  %p3048_p2 = por %p3047_p8, %p3046_p6 }
  0xb9   : > { %p3049_p4 = pnand %p3048_p2, %p3042_p7 }
  0xbb   : > { %3052 = shalt.err (!%p3049_p4)
}
  0xbc   : > { %2778 = dma.hbm_to_vmem [thread:$0]  (!%p3657_p1), %s3666_s24, 128, %s3669_s3, %s3673_s20  }
  0xbd   : > { %s3376_s7 = smov [#allocation13]   ;;  %s3377_s5 = smov [#allocation16]  }
  0xbe   : > { %s397_s12 = sshll.u32 %s3376_s7, 4  ;;  %s423_s1 = sshll.u32 %s3377_s5, 4  ;;  %s398_s12 = int_to_ptr.vmem [resolvable:$true] %s397_s12  ;;  %s3703_s1 = int_to_ptr.vmem [resolvable:$true] %s423_s1 }
  0xbf   : > { %s4230_s6 = sld [smem:[#allocation44_spill]]  ;;  %p4231_p8 = scmp.ne.s32.totalorder %s4215_s29, 0 }
  0xc5   : > { %s3053_s4 = scalar_lea.hbm %s4230_s6, 1024 }
  0xc6   : > { %p3054_p6 = scmp.ne.s32.totalorder %s4230_s6, %s3053_s4  ;;  %p3060_p10 = scmp.lt.u32.totalorder %s3053_s4, %s4230_s6 }
  0xc8   : > { %p3056_p7 = pnand %p3054_p6, %p4231_p8 }
  0xca   : > { %p3057_p9 = pneg %p3056_p7 }
  0xcc   : > { %p3062_p0 = pnand %p3060_p10, %p3057_p9 }
  0xce   : > { %3065 = shalt.err (!%p3062_p0)
}
  0xcf   : > { %s3066_s24 = scalar_lea.vmem %s398_s12, 1024  ;;  %p3074_p13 = scmp.lt.s32.totalorder %s398_s12, %s398_s12 }
  0xd0   : > { %p3067_p5 = scmp.ne.s32.totalorder %s398_s12, %s3066_s24  ;;  %p3075_p2 = scmp.lt.s32.totalorder %s3066_s24, %s3066_s24 }
  0xd2   : > { %p3069_p11 = pnand %p3067_p5, %p4231_p8  ;;  %p3076_p4 = por %p3075_p2, %p3074_p13 }
  0xd4   : > { %p3070_p3 = pneg %p3069_p11 }
  0xd6   : > { %p3077_p1 = pnand %p3076_p4, %p3070_p3 }
  0xd8   : > { %3080 = shalt.err (!%p3077_p1)
}
  0xd9   : > { %p4232_p6 = scmp.ne.s32.totalorder %s4213_s13, 0  ;;  %s4233_s16 = smov 4  }
  0xda   : > { %s4234_s7 = smov 64   ;;  %s3081_s4 = scalar_lea.hbm %s4168_s8, 1024 }
  0xdb   : > { %2756 = dma.hbm_to_vmem [thread:$0]  (!%p4232_p6), %s4230_s6, 1024, %s398_s12, [#allocation12], %s4234_s7, %s4234_s7, %s4233_s16  }
  0xdc   : > { %p3082_p7 = scmp.ne.s32.totalorder %s4168_s8, %s3081_s4  ;;  %p3088_p10 = scmp.lt.u32.totalorder %s3081_s4, %s4168_s8 }
  0xde   : > { %p3084_p1 = pnand %p3082_p7, %p4231_p8 }
  0xe0   : > { %p3085_p9 = pneg %p3084_p1 }
  0xe2   : > { %p3090_p0 = pnand %p3088_p10, %p3085_p9 }
  0xe4   : > { %3093 = shalt.err (!%p3090_p0)
}
  0xe5   : > { %s3094_s12 = scalar_lea.vmem %s3703_s1, 1024  ;;  %p3102_p13 = scmp.lt.s32.totalorder %s3703_s1, %s3703_s1 }
  0xe6   : > { %p3095_p5 = scmp.ne.s32.totalorder %s3703_s1, %s3094_s12  ;;  %p3103_p2 = scmp.lt.s32.totalorder %s3094_s12, %s3094_s12 }
  0xe8   : > { %p3097_p11 = pnand %p3095_p5, %p4231_p8  ;;  %p3104_p4 = por %p3103_p2, %p3102_p13 }
  0xea   : > { %p3098_p3 = pneg %p3097_p11 }
  0xec   : > { %p3105_p7 = pnand %p3104_p4, %p3098_p3 }
  0xee   : > { %3108 = shalt.err (!%p3105_p7)
}
  0xef   : > { %2762 = dma.hbm_to_vmem [thread:$0]  (!%p4232_p6), %s4168_s8, 1024, %s3703_s1, [#allocation15], %s4234_s7, %s4234_s7, %s4233_s16  }
  0xf0   : > { %s3378_s5 = smov [#allocation19]   ;;  %s3379_s18 = smov [#allocation20]  }
  0xf1   : > { %s449_s17 = sshll.u32 %s3378_s5, 4  ;;  %s463_s4 = sshll.u32 %s3379_s18, 4  ;;  %s450_s17 = int_to_ptr.vmem [resolvable:$true] %s449_s17  ;;  %s3752_s4 = int_to_ptr.vmem [resolvable:$true] %s463_s4 }
  0xf2   : > { %s3109_s24 = scalar_lea.hbm %s4170_s10, 256 }
  0xf3   : > { %p3110_p1 = scmp.ne.s32.totalorder %s4170_s10, %s3109_s24  ;;  %p3116_p0 = scmp.lt.u32.totalorder %s3109_s24, %s4170_s10 }
  0xf5   : > { %p3112_p9 = pnand %p3110_p1, %p4231_p8 }
  0xf7   : > { %p3113_p10 = pneg %p3112_p9 }
  0xf9   : > { %p3118_p5 = pnand %p3116_p0, %p3113_p10 }
  0xfb   : > { %3121 = shalt.err (!%p3118_p5)
}
  0xfc   : > { %s3122_s30 = scalar_lea.vmem %s450_s17, 256  ;;  %p3130_p2 = scmp.lt.s32.totalorder %s450_s17, %s450_s17 }
  0xfd   : > { %p3123_p11 = scmp.ne.s32.totalorder %s450_s17, %s3122_s30  ;;  %p3131_p4 = scmp.lt.s32.totalorder %s3122_s30, %s3122_s30 }
  0xff   : > { %p3125_p3 = pnand %p3123_p11, %p4231_p8  ;;  %p3132_p7 = por %p3131_p4, %p3130_p2 }
 0x101   : > { %p3126_p13 = pneg %p3125_p3 }
 0x103   : > { %p3133_p12 = pnand %p3132_p7, %p3126_p13 }
 0x105   : > { %3136 = shalt.err (!%p3133_p12)
}
 0x106   : > { %2768 = dma.hbm_to_vmem [thread:$0]  (!%p4232_p6), %s4170_s10, 256, %s450_s17, [#allocation18], %s4234_s7, %s4234_s7, %s4233_s16  }
 0x107   : > { %s3137_s3 = scalar_lea.hbm %s4171_s11, 16 }
 0x108   : > { %p3138_p1 = scmp.ne.s32.totalorder %s4171_s11, %s3137_s3  ;;  %p3144_p10 = scmp.lt.u32.totalorder %s3137_s3, %s4171_s11 }
 0x10a   : > { %p3140_p12 = pnand %p3138_p1, %p4231_p8 }
 0x10c   : > { %p3141_p9 = pneg %p3140_p12 }
 0x10e   : > { %p3146_p0 = pnand %p3144_p10, %p3141_p9 }
 0x110   : > { %3149 = shalt.err (!%p3146_p0)
}
 0x111   : > { %s3150_s16 = scalar_lea.vmem %s3752_s4, 16  ;;  %s3157_s7 = scalar_lea.vmem %s3752_s4, 32 }
 0x112   : > { %p3151_p5 = scmp.ne.s32.totalorder %s3752_s4, %s3150_s16  ;;  %p3158_p13 = scmp.lt.s32.totalorder %s3752_s4, %s3752_s4 }
 0x113   : > { %p3159_p2 = scmp.lt.s32.totalorder %s3157_s7, %s3150_s16 }
 0x114   : > { %p3153_p11 = pnand %p3151_p5, %p4231_p8 }
 0x115   : > { %p3160_p4 = por %p3159_p2, %p3158_p13 }
 0x116   : > { %p3154_p3 = pneg %p3153_p11 }
 0x118   : > { %p3161_p7 = pnand %p3160_p4, %p3154_p3 }
 0x11a   : > { %3164 = shalt.err (!%p3161_p7)
}
 0x11b   : > { %2771 = dma.hbm_to_vmem [thread:$0]  (!%p4232_p6), %s4171_s11, 16, %s3752_s4, [#allocation21]  }
 0x11c   : > { %s3803_s5 = scalar_lea.hbm %s4160_s0, %s3649_s15  ;;  %s478_s18 = scalar_lea.vmem [#allocation2], %s3653_s19 }
 0x11d   : > { %s486_s13 = sshll.u32 %s478_s18, 4  ;;  %s4235_s25 = sand.u32 1, %s3353_s23   ;;  %s487_s13 = int_to_ptr.vmem [resolvable:$true] %s486_s13 }
 0x11e   : > { %s475_s3 = scalar_lea.sflag [#allocation3], %s4235_s25  ;;  %s3165_s24 = scalar_lea.hbm %s3803_s5, 128 }
 0x11f   : > { %p3166_p8 = scmp.ne.s32.totalorder %s3803_s5, %s3165_s24  ;;  %p4236_p1 = scmp.ne.s32.totalorder %s4229_s9, 0 }
 0x120   : > { %s3170_s21 = scalar_lea.hbm %s4160_s0, 256  ;;  %p3171_p6 = scmp.lt.u32.totalorder %s3803_s5, %s4160_s0 }
 0x121   : > { %p3168_p12 = pnand %p3166_p8, %p4236_p1  ;;  %p3172_p10 = scmp.lt.u32.totalorder %s3170_s21, %s3165_s24 }
 0x122   : > { %p3174_p5 = scmp.lt.u32.totalorder %s3165_s24, %s3803_s5 }
 0x123   : > { %p3169_p9 = pneg %p3168_p12  ;;  %p3173_p0 = por %p3172_p10, %p3171_p6 }
 0x125   : > { %p3175_p11 = por %p3174_p5, %p3173_p0 }
 0x127   : > { %p3176_p3 = pnand %p3175_p11, %p3169_p9 }
 0x129   : > { %3179 = shalt.err (!%p3176_p3)
}
 0x12a   : > { %s3180_s7 = scalar_lea.vmem %s487_s13, 128  ;;  %s3380_s17 = smov [#allocation2]  }
 0x12b   : > { %p3181_p13 = scmp.ne.s32.totalorder %s487_s13, %s3180_s7  ;;  %s3185_s30 = sshll.u32 %s3380_s17, 4  ;;  %s3186_s30 = int_to_ptr.vmem [resolvable:$false] %s3185_s30 }
 0x12c   : > { %s3187_s29 = scalar_lea.vmem %s3186_s30, 256  ;;  %p3188_p7 = scmp.lt.s32.totalorder %s487_s13, %s3186_s30 }
 0x12d   : > { %p3183_p2 = pnand %p3181_p13, %p4236_p1  ;;  %p3189_p8 = scmp.lt.s32.totalorder %s3187_s29, %s3180_s7 }
 0x12f   : > { %p3184_p4 = pneg %p3183_p2  ;;  %p3190_p12 = por %p3189_p8, %p3188_p7 }
 0x131   : > { %p3191_p6 = pnand %p3190_p12, %p3184_p4 }
 0x133   : > { %3194 = shalt.err (!%p3191_p6)
}
 0x134   : > { %p4237_p10 = scmp.ne.s32.totalorder %s4227_s28, 0  ;;  %s4238_s25 = sld [smem:[#allocation40_spill]] }
 0x135   : > { %s515_s12 = scalar_lea.vmem [#allocation7], %s3653_s19 }
 0x136   : > { %2775 = dma.hbm_to_vmem [thread:$0]  (!%p4237_p10), %s3803_s5, 128, %s487_s13, %s475_s3  }
 0x137   : > { %s522_s21 = sshll.u32 %s515_s12, 4  ;;  %s523_s21 = int_to_ptr.vmem [resolvable:$true] %s522_s21 }
 0x13a   : > { %s4239_s4 = smov %s4238_s25  ;;  %s3829_s24 = scalar_lea.hbm %s4238_s25, %s3649_s15 }
 0x13b   : > { %s3195_s1 = scalar_lea.hbm %s3829_s24, 128  ;;  %s3200_s5 = scalar_lea.hbm %s4239_s4, 256 }
 0x13c   : > { %p3196_p9 = scmp.ne.s32.totalorder %s3829_s24, %s3195_s1  ;;  %p3201_p11 = scmp.lt.u32.totalorder %s3829_s24, %s4239_s4 }
 0x13d   : > { %p3202_p3 = scmp.lt.u32.totalorder %s3200_s5, %s3195_s1  ;;  %p3204_p2 = scmp.lt.u32.totalorder %s3195_s1, %s3829_s24 }
 0x13e   : > { %p3198_p0 = pnand %p3196_p9, %p4236_p1 }
 0x13f   : > { %p3203_p13 = por %p3202_p3, %p3201_p11 }
 0x140   : > { %p3199_p5 = pneg %p3198_p0 }
 0x141   : > { %p3205_p4 = por %p3204_p2, %p3203_p13 }
 0x143   : > { %p3206_p7 = pnand %p3205_p4, %p3199_p5 }
 0x145   : > { %3209 = shalt.err (!%p3206_p7)
}
 0x146   : > { %s3210_s17 = scalar_lea.vmem %s523_s21, 128  ;;  %s3381_s30 = smov [#allocation7]  }
 0x147   : > { %p3211_p8 = scmp.ne.s32.totalorder %s523_s21, %s3210_s17  ;;  %s3215_s29 = sshll.u32 %s3381_s30, 4  ;;  %s3216_s29 = int_to_ptr.vmem [resolvable:$false] %s3215_s29 }
 0x148   : > { %s3217_s6 = scalar_lea.vmem %s3216_s29, 256  ;;  %p3218_p9 = scmp.lt.s32.totalorder %s523_s21, %s3216_s29 }
 0x149   : > { %p3213_p12 = pnand %p3211_p8, %p4236_p1  ;;  %p3219_p0 = scmp.lt.s32.totalorder %s3217_s6, %s3210_s17 }
 0x14b   : > { %p3214_p6 = pneg %p3213_p12  ;;  %p3220_p10 = por %p3219_p0, %p3218_p9 }
 0x14d   : > { %p3221_p3 = pnand %p3220_p10, %p3214_p6 }
 0x14f   : > { %3224 = shalt.err (!%p3221_p3)
}
 0x150   : > { %p4240_p11 = scmp.ne.s32.totalorder %s4227_s28, 0  ;;  %s4241_s12 = sld [smem:[#allocation41_spill]] }
 0x151   : > { %s533_s16 = scalar_lea.vmem [#allocation8], %s3653_s19  ;;  %s4242_s5 = sand.u32 1, %s3365_s26  }
 0x152   : > { %2781 = dma.hbm_to_vmem [thread:$0]  (!%p4240_p11), %s3829_s24, 128, %s523_s21, %s3673_s20  }
 0x153   : > { %s541_s7 = sshll.u32 %s533_s16, 4  ;;  %s530_s13 = scalar_lea.sflag [#allocation9], %s4242_s5  ;;  %s542_s7 = int_to_ptr.vmem [resolvable:$true] %s541_s7 }
 0x156   : > { %s3854_s1 = scalar_lea.hbm %s4241_s12, %s3649_s15  ;;  %s3230_s21 = scalar_lea.hbm %s4241_s12, 256 }
 0x157   : > { %s3225_s3 = scalar_lea.hbm %s3854_s1, 128  ;;  %p3231_p2 = scmp.lt.u32.totalorder %s3854_s1, %s4241_s12 }
 0x158   : > { %p3226_p10 = scmp.ne.s32.totalorder %s3854_s1, %s3225_s3  ;;  %p3232_p4 = scmp.lt.u32.totalorder %s3230_s21, %s3225_s3 }
 0x159   : > { %p3234_p8 = scmp.lt.u32.totalorder %s3225_s3, %s3854_s1 }
 0x15a   : > { %p3228_p5 = pnand %p3226_p10, %p4236_p1  ;;  %p3233_p7 = por %p3232_p4, %p3231_p2 }
 0x15c   : > { %p3229_p13 = pneg %p3228_p5  ;;  %p3235_p12 = por %p3234_p8, %p3233_p7 }
 0x15e   : > { %p3236_p6 = pnand %p3235_p12, %p3229_p13 }
 0x160   : > { %3239 = shalt.err (!%p3236_p6)
}
 0x161   : > { %s3240_s19 = scalar_lea.vmem %s542_s7, 128  ;;  %s3382_s30 = smov [#allocation8]  }
 0x162   : > { %p3241_p9 = scmp.ne.s32.totalorder %s542_s7, %s3240_s19  ;;  %s3245_s29 = sshll.u32 %s3382_s30, 4  ;;  %s3246_s29 = int_to_ptr.vmem [resolvable:$false] %s3245_s29 }
 0x163   : > { %s3247_s6 = scalar_lea.vmem %s3246_s29, 256  ;;  %p3248_p10 = scmp.lt.s32.totalorder %s542_s7, %s3246_s29 }
 0x164   : > { %p3243_p0 = pnand %p3241_p9, %p4236_p1  ;;  %p3249_p5 = scmp.lt.s32.totalorder %s3247_s6, %s3240_s19 }
 0x166   : > { %p3244_p3 = pneg %p3243_p0  ;;  %p3250_p11 = por %p3249_p5, %p3248_p10 }
 0x168   : > { %p3251_p2 = pnand %p3250_p11, %p3244_p3 }
 0x16a   : > { %3254 = shalt.err (!%p3251_p2)
}
 0x16b   : > { %p4243_p4 = scmp.ne.s32.totalorder %s4227_s28, 0  ;;  %s4244_s18 = sld [smem:[#allocation35_spill]] }
 0x16d   : > { %2784 = dma.hbm_to_vmem [thread:$0]  (!%p4243_p4), %s3854_s1, 128, %s542_s7, %s530_s13  }
 0x171   : > { %p4245_p13 = scmp.ne.s32.totalorder %s4244_s18, 0 }
 0x172   : > { %s3879_s9 = sand.u32 (!%p4245_p13), 1, %s3349_s22   ;;  %p4246_p1 = scmp.ne.s32.totalorder (!%p4245_p13), %s4222_s2, 0 }
 0x173   : > { %550 = sbr.rel (%p4245_p13) target bundleno = 3599 (0xe0f), region = 68  ;;  %s3882_s25 = sshll.u32 (!%p4245_p13), %s3879_s9, 3 }
 0x174   : > { %s553_s16 = scalar_lea.sflag (!%p4245_p13), [#allocation3], %s3879_s9  ;;  %s556_s5 = scalar_lea.vmem (!%p4245_p13), [#allocation2], %s3882_s25 }
 0x17a   : > { %3308 = dma.done.wait (%p4246_p1), %s553_s16, 128  }
 0x17b   : > { %3310 = vsyncadd (%p4246_p1), %s553_s16, 4294967168  ;;  %s561_s28 = sand.u32 1, %s3483_s27   ;;  %s565_s7 = scalar_lea.vmem [#allocation5], %s3882_s25 }
 0x17c   : > { %s562_s1 = scalar_lea.sflag [#allocation6], %s561_s28 }
 0x17d   : > { %3312 = dma.done.wait (%p4246_p1), %s562_s1, 256  }
 0x17e   : > { %3314 = vsyncadd (%p4246_p1), %s562_s1, 4294967040  ;;  %s574_s13 = scalar_lea.vmem [#allocation7], %s3882_s25  ;;  %s580_s3 = scalar_lea.sflag [#allocation9], %s561_s28 }
 0x17f   : > { %s583_s20 = scalar_lea.vmem [#allocation8], %s3882_s25 }
 0x180   : > { %3316 = dma.done.wait (%p4246_p1), %s580_s3, 128  }
 0x181   : > { %3318 = vsyncadd (%p4246_p1), %s580_s3, 4294967168  ;;  %p4247_p11 = scmp.eq.s32.totalorder %s3483_s27, 0 }
 0x183   : > { %3320 = dma.done.wait (%p4247_p11), [#allocation9], 1024   ;;  %p4248_p7 = pmov %p4247_p11 }
 0x185   : > { %3322 = vsyncadd (%p4248_p7), [#allocation9], 4294966272  ;;  %p4249_p8 = pmov %p4248_p7 }
 0x186   : > { %p4250_p12 = pmov %p4248_p7 }
 0x187   : > { %3324 = dma.done.wait (%p4249_p8), [#allocation12], 1088  }
 0x188   : > { %3326 = vsyncadd (%p4250_p12), [#allocation12], 4294966208  ;;  %p4251_p6 = pmov %p4248_p7 }
 0x18a   : > { %3328 = dma.done.wait (%p4251_p6), [#allocation15], 1088   ;;  %p4252_p9 = pmov %p4251_p6 }
 0x18b   : > { %p4253_p0 = pmov %p4251_p6 }
 0x18c   : > { %3330 = vsyncadd (%p4252_p9), [#allocation15], 4294966208 }
 0x18d   : > { %3332 = dma.done.wait (%p4253_p0), [#allocation18], 320   ;;  %p4254_p3 = pmov %p4253_p0 }
 0x18e   : > { %p4255_p10 = pmov %p4253_p0 }
 0x18f   : > { %3334 = vsyncadd (%p4254_p3), [#allocation18], 4294966976 }
 0x190   : > { %3336 = dma.done.wait (%p4255_p10), [#allocation21], 16   ;;  %p4256_p5 = pmov %p4253_p0 }
 0x191   : > { %v3383_v0 = vmov 0.0   ;;  %vm3384_vm0 = vmmov 0   ;;  %v2871_v1 = vld [vmem:[#allocation10] sm:$0xff]   ;;  %v2872_v2 = vld [vmem:[#allocation10 + $0x8] sm:$0xff]   ;;  %vm710_vm1 = vcmask 261120   ;;  %v675_v7 = vld [vmem:[%s565_s7] sm:$0xff]  ;;  %v679_v30 = vlaneseq }
 0x192   : > { %3338 = vsyncadd (%p4256_p5), [#allocation21], 4294967280  ;;  %2525 = vmatprep.subr.bf16.mxu1 %v3383_v0  ;;  %2529 = vmatprep.mubr.msk.bf16.mxu1 %vm3384_vm0, %v3383_v0  ;;  %v673_v3 = vld [vmem:[%s556_s5] sm:$0xff]  ;;  %v3941_v8 = vpack.c.bf16 %v675_v7, %v675_v7  ;;  %v686_v9 = vld [vmem:[%s583_s20] sm:$0xff]  ;;  %v3385_v10 = vmov 0   ;;  %vm889_vm2 = vcmask 64512  }
 0x193   : > { %2541 = vmatprep.subr.bf16.mxu0 %v3383_v0  ;;  %2545 = vmatprep.mubr.msk.bf16.mxu0 %vm3384_vm0, %v3383_v0  ;;  %v2873_v4 = vld [vmem:[#allocation13] sm:$0xff]   ;;  %v3931_v5 = vpack.c.bf16 %v673_v3, %v673_v3  ;;  %v2874_v6 = vld [vmem:[#allocation13 + $0x8] sm:$0xff]   ;;  %v2400_v22 = vld [vmem:[#allocation11] ss:$0 sm:$0xff]  ;;  %v3965_v31 = vshrl.u32 %v679_v30, 7  ;;  %v3967_v32 = vand.u32 127, %v679_v30 }
 0x194   : > { %2526 = vmatpush3.bf16.msra.mxu1 %v2871_v1  ;;  %2870 = vset.pattern.permute.xlu0 %v3385_v10  ;;  %v2404_v15 = vld [vmem:[#allocation14] ss:$0 sm:$0xff]  ;;  %v2875_v26 = vld [vmem:[#allocation16] sm:$0xff]   ;;  %v2876_v27 = vld [vmem:[#allocation16 + $0x8] sm:$0xff]   ;;  %vm959_vm4 = vcmask 1043456   ;;  %s4257_s27 = sld [smem:[#allocation33_spill]] }
 0x195   : > { %2527 = vmatprep.subr.bf16.mxu1 %v3383_v0  ;;  %939 = vperm.xlu0 %2870, %v686_v9   ;;  %v677_v28 = vld [vmem:[%s574_s13] sm:$0xff]  ;;  %vm685_vm3 = vcmp.le.s32.totalorder %v3967_v32, %v3965_v31  ;;  %v2879_v55 = vld [vmem:[#allocation10 + $0x10] sm:$0xff]   ;;  %v2880_v56 = vld [vmem:[#allocation10 + $0x18] sm:$0xff]   ;;  %vm2115_vm5 = vcmp.eq.s32.totalorder %v3965_v31, 0  ;;  %s670_s24 = scalar_lea.vmem [#allocation22], %s3882_s25  ;;  %s4258_s19 = sld [smem:[#allocation47_spill]] }
 0x196   : > { %2542 = vmatpush3.bf16.msra.mxu0 %v2875_v26  ;;  %v3958_v29 = vpack.c.bf16 %v677_v28, %v677_v28  ;;  %v2408_v50 = vld [vmem:[#allocation17] ss:$0 sm:$0xff]  ;;  %v2877_v60 = vld [vmem:[#allocation13 + $0x10] sm:$0xff]   ;;  %v2878_v62 = vld [vmem:[#allocation13 + $0x18] sm:$0xff]   ;;  %s2143_s21 = sshll.u32 %s670_s24, 4  ;;  %s2129_s29 = scalar_lea.sflag [#allocation4], %s3879_s9  ;;  %s4112_s21 = int_to_ptr.vmem [resolvable:$true] %s2143_s21 }
 0x197   : > { %2543 = vmatprep.subr.bf16.mxu0 %v3383_v0  ;;  %v2418_v10 = vld [vmem:[#allocation14 + $0x1] ss:$0 sm:$0xff]  ;;  %v1712_v32 = vld [vmem:[#allocation19 + $0x8] sm:$0xf]  ;;  %s3255_s6 = scalar_lea.vmem %s4112_s21, 128  ;;  %p4259_p4 = scmp.ne.s32.totalorder %s4223_s14, 0 }
 0x198   : > { %2528 = vmatpush3.bf16.msra.mxu1 %v2872_v2  ;;  %p3256_p2 = scmp.ne.s32.totalorder %s4112_s21, %s3255_s6  ;;  %s3386_s18 = smov [#allocation22]  }
 0x199   : > { %2533 = vmatprep.subr.bf16.mxu1 %v3383_v0  ;;  %s3259_s25 = sshll.u32 %s3386_s18, 4  ;;  %s3260_s25 = int_to_ptr.vmem [resolvable:$false] %s3259_s25 }
 0x19a   : > { %2544 = vmatpush3.bf16.msra.mxu0 %v2876_v27  ;;  %s2462_s2 = sshll.u32 %s4257_s27, 7  ;;  %p3257_p13 = pnand %p3256_p2, %p4259_p4 }
 0x19b   : > { %2530 = vmatmul.mubr.msk.bf16.vlgmr.msra.gmra.mrb[0].mxu1 %vm710_vm1, %v3931_v5  ;;  %2555 = vmatprep.subr.bf16.mxu0 %v3383_v0  ;;  %s4110_s30 = scalar_lea.hbm %s4258_s19, %s2462_s2  ;;  %s3261_s16 = scalar_lea.vmem %s3260_s25, 256 }
 0x19c   : > { %2534 = vmatpush3.bf16.msra.mxu1 %v2873_v4  ;;  %2537 = vmatprep.mubr.msk.bf16.mxu1 %vm3384_vm0, %v3383_v0  ;;  %p3258_p1 = pneg %p3257_p13  ;;  %p3262_p11 = scmp.lt.s32.totalorder %s4112_s21, %s3260_s25 }
 0x19d   : > { %2535 = vmatprep.subr.bf16.mxu1 %v3383_v0  ;;  %2546 = vmatmul.mubr.msk.bf16.vlgmr.msra.gmra.mrb[0].mxu0 %vm710_vm1, %v3958_v29  ;;  %p3263_p7 = scmp.lt.s32.totalorder %s3261_s16, %s3255_s6 }
 0x19e   : > { %2557 = vmatprep.mubr.msk.bf16.mxu0 %vm3384_vm0, %v3383_v0 }
 0x19f   : > { %p3264_p8 = por %p3263_p7, %p3262_p11 }
 0x1a0   : > { %2536 = vmatpush3.bf16.msra.mxu1 %v2874_v6 }
 0x1a1   : > { %2549 = vmatprep.subr.bf16.mxu1 %v3383_v0  ;;  %p3265_p12 = pnand %p3264_p8, %p3258_p1 }
 0x1a3   : > { %2538 = vmatmul.mubr.msk.bf16.vlgmr.msra.gmra.mrb[4].mxu1 %vm710_vm1, %v3941_v8 }
 0x1a4   : > { %2551 = vmatprep.mubr.msk.bf16.mxu1 %vm3384_vm0, %v3383_v0 }
 0x214   : > { %v3969_v34 = vpop.permute.xlu0 %939 }
 0x26e   : > { %v748_v11 = vpop.f32.mrb[0].mxu1 }
 0x26f   : > { %v2531_v12 = vpop.f32.mrb[1].mxu1  ;;  %v749_v24 = vadd.f32 %v2400_v22, %v748_v11  ;;  %v2882_v22 = vld [vmem:[#allocation16 + $0x18] sm:$0xff]  }
 0x270   : > { %v751_v13 = vpop.f32.mrb[2].mxu1  ;;  %v882_v47 = vpop.f32.mrb[0].mxu0 }
 0x271   : > { %v2532_v14 = vpop.f32.mrb[3].mxu1  ;;  %v754_v25 = vpack.c.bf16 %v749_v24, %v749_v24  ;;  %v2547_v48 = vpop.f32.mrb[1].mxu0  ;;  %v883_v52 = vadd.f32 %v2408_v50, %v882_v47 }
 0x272   : > { %v885_v49 = vpop.f32.mrb[2].mxu0 }
 0x273   : > { %v2548_v51 = vpop.f32.mrb[3].mxu0  ;;  %v888_v53 = vpack.c.bf16 %v883_v52, %v883_v52 }
 0x274   : > { %v2883_v51 = vld [vmem:[#allocation10 + $0x20] sm:$0xff]  }
 0x275   : > { %v961_v54 = vsel %vm959_vm4, %v888_v53, 0  ;;  %v2884_v53 = vld [vmem:[#allocation10 + $0x28] sm:$0xff]  }
 0x276   : > { %v815_v16 = vpop.f32.mrb[4].mxu1  ;;  %2556 = vmatpush3.bf16.msra.mxu0 %v961_v54  ;;  %v2885_v54 = vld [vmem:[#allocation13 + $0x20] sm:$0xff]  }
 0x277   : > { %v816_v17 = vadd.f32 %v2404_v15, %v815_v16  ;;  %v2539_v18 = vpop.f32.mrb[5].mxu1  ;;  %2569 = vmatprep.subr.bf16.mxu0 %v3383_v0  ;;  %v2414_v15 = vld [vmem:[#allocation11 + $0x1] ss:$0 sm:$0xff] }
 0x278   : > { %v818_v19 = vpop.f32.mrb[6].mxu1 }
 0x279   : > { %v821_v20 = vpack.c.bf16 %v816_v17, %v816_v17  ;;  %v2540_v21 = vpop.f32.mrb[7].mxu1 }
 0x27a   : > { %v2881_v21 = vld [vmem:[#allocation16 + $0x10] sm:$0xff]  }
 0x27b   : > { %v894_v23 = vsel %vm889_vm2, %v821_v20, 0 }
 0x27c   : > { %2550 = vmatpush3.bf16.xpose.msra.mxu1 %v894_v23 }
 0x27d   : > { %2561 = vmatprep.subr.bf16.mxu1 %v3383_v0 }
 0x283   : > { %2552 = vmatmul.mubr.msk.bf16.vlgmr.msra.gmra.mrb[8].mxu1 %vm889_vm2, %v754_v25 }
 0x284   : > { %2565 = vmatprep.mubr.msk.bf16.mxu1 %vm3384_vm0, %v3383_v0  ;;  %2562 = vmatpush3.bf16.msra.mxu1 %v2879_v55  ;;  %v2886_v55 = vld [vmem:[#allocation13 + $0x28] sm:$0xff]  }
 0x285   : > { %2563 = vmatprep.subr.bf16.mxu1 %v3383_v0 }
 0x288   : > { %2564 = vmatpush3.bf16.msra.mxu1 %v2880_v56  ;;  %v1312_v56 = vld [vmem:[#allocation19 + $0x4] sm:$0xf] }
 0x289   : > { %2577 = vmatprep.subr.bf16.mxu1 %v3383_v0 }
 0x28b   : > { %2566 = vmatmul.mubr.msk.bf16.vlgmr.msra.gmra.mrb[12].mxu1 %vm710_vm1, %v3931_v5 }
 0x28c   : > { %2581 = vmatprep.mubr.msk.bf16.mxu1 %vm3384_vm0, %v3383_v0  ;;  %2578 = vmatpush3.bf16.msra.mxu1 %v2881_v21  ;;  %v2888_v21 = vld [vmem:[#allocation10 + $0x38] sm:$0xff]  }
 0x28d   : > { %2579 = vmatprep.subr.bf16.mxu1 %v3383_v0 }
 0x290   : > { %2580 = vmatpush3.bf16.msra.mxu1 %v2882_v22  ;;  %v2889_v22 = vld [vmem:[#allocation13 + $0x30] sm:$0xff]  }
 0x291   : > { %2591 = vmatprep.subr.bf16.mxu1 %v3383_v0 }
 0x293   : > { %2582 = vmatmul.mubr.msk.bf16.vlgmr.msra.gmra.mrb[16].mxu1 %vm710_vm1, %v3958_v29 }
 0x294   : > { %2593 = vmatprep.mubr.msk.bf16.mxu1 %vm3384_vm0, %v3383_v0 }
 0x356   : > { %v930_v33 = vpop.f32.mrb[8].mxu1 }
 0x357   : > { %v936_v35 = vmul.f32 0.35355338, %v930_v33  ;;  %v2553_v36 = vpop.f32.mrb[9].mxu1 }
 0x358   : > { %v933_v37 = vpop.f32.mrb[10].mxu1 }
 0x359   : > { %v2554_v38 = vpop.f32.mrb[11].mxu1  ;;  %v942_v39 = vmul.f32 %v3969_v34, %v936_v35 }
 0x35b   : > { %v943_v40 = vsel %vm685_vm3, %v942_v39, -1e+32 }
 0x35c   : > { %v944_v41 = vsel %vm889_vm2, %v943_v40, -inf }
 0x35d   : > { %945 = vmax.xlane.f32.xlu0 %v944_v41 }
 0x35e   : > { %v1064_v63 = vpop.f32.mrb[12].mxu1 }
 0x35f   : > { %v2567_v1 = vpop.f32.mrb[13].mxu1  ;;  %v1065_v19 = vadd.f32 %v2414_v15, %v1064_v63 }
 0x360   : > { %v1067_v2 = vpop.f32.mrb[14].mxu1 }
 0x361   : > { %v2568_v3 = vpop.f32.mrb[15].mxu1  ;;  %v1070_v20 = vpack.c.bf16 %v1065_v19, %v1065_v19 }
 0x3ea   : > { %v946_v42 = vpop.xlane.xlu0 %945 }
 0x3eb   : > { %v947_v43 = vsub.f32 %v943_v40, %v946_v42  ;;  %v1196_v40 = vpop.f32.mrb[16].mxu1 }
 0x3ec   : > { %v2583_v41 = vpop.f32.mrb[17].mxu1 }
 0x3ed   : > { %v948_v44 = vmul.f32 1.442695, %v947_v43  ;;  %v1199_v42 = vpop.f32.mrb[18].mxu1  ;;  %v2422_v43 = vld [vmem:[#allocation17 + $0x1] ss:$0 sm:$0xff] }
 0x3ef   : > { %2895 = vpow2.f32 %v948_v44  ;;  %v2584_v44 = vpop.f32.mrb[19].mxu1 }
 0x3f0   : > { %v2445_v44 = vld [vmem:[#allocation11 + $0x3] ss:$0 sm:$0xff] }
 0x3f9   : > { %v2896_v45 = vpop.eup %2895 }
 0x3fa   : > { %v950_v46 = vsel %vm889_vm2, %v2896_v45, 0.0 }
 0x3fb   : > { %951 = vadd.xlane.f32.xlu1 %v950_v46 }
 0x488   : > { %v952_v57 = vpop.xlane.xlu1 %951 }
 0x489   : > { %2897 = vrcp.f32 %v952_v57  ;;  %v1317_v57 = vsel %vm959_vm4, %v1312_v56, 0 }
 0x493   : > { %v2898_v58 = vpop.eup %2897 }
 0x494   : > { %v954_v59 = vmul.f32 %v2898_v58, %v2896_v45  ;;  %v1197_v45 = vadd.f32 %v2422_v43, %v1196_v40  ;;  %v1004_v58 = vld [vmem:[#allocation19] sm:$0xf]  ;;  %v2449_v40 = vld [vmem:[#allocation14 + $0x3] ss:$0 sm:$0xff] }
 0x496   : > { %v955_v61 = vpack.c.bf16 %v954_v59, %v954_v59  ;;  %v1202_v46 = vpack.c.bf16 %v1197_v45, %v1197_v45 }
 0x498   : > { %2558 = vmatmul.mubr.msk.bf16.vlgmr.msra.gmra.mrb[4].mxu0 %vm889_vm2, %v955_v61  ;;  %v1268_v47 = vsel %vm959_vm4, %v1202_v46, 0 }
 0x499   : > { %2570 = vmatpush3.bf16.msra.mxu0 %v2877_v60  ;;  %2573 = vmatprep.mubr.msk.bf16.mxu0 %vm3384_vm0, %v3383_v0 }
 0x49a   : > { %2571 = vmatprep.subr.bf16.mxu0 %v3383_v0  ;;  %2592 = vmatpush3.bf16.msra.mxu1 %v1268_v47 }
 0x49b   : > { %2609 = vmatprep.subr.bf16.mxu1 %v3383_v0 }
 0x49d   : > { %2572 = vmatpush3.bf16.msra.mxu0 %v2878_v62  ;;  %v1363_v62 = vsel %vm959_vm4, %v1004_v58, 0 }
 0x49e   : > { %2585 = vmatprep.subr.bf16.mxu0 %v3383_v0 }
 0x4a0   : > { %2574 = vmatmul.mubr.msk.bf16.vlgmr.msra.gmra.mrb[8].mxu0 %vm710_vm1, %v3941_v8 }
 0x4a1   : > { %2587 = vmatprep.mubr.msk.bf16.mxu0 %vm3384_vm0, %v3383_v0 }
 0x56b   : > { %v3996_v4 = vpop.f32.mrb[4].mxu0 }
 0x56c   : > { %v2559_v6 = vpop.f32.mrb[5].mxu0 }
 0x56d   : > { %v1000_v7 = vpop.f32.mrb[6].mxu0 }
 0x56e   : > { %v2560_v9 = vpop.f32.mrb[7].mxu0 }
 0x56f   : > { %v1003_v9 = vpack.c.bf16 %v3996_v4, %v3996_v4  ;;  %v2887_v4 = vld [vmem:[#allocation10 + $0x30] sm:$0xff]  }
 0x573   : > { %v1130_v11 = vpop.f32.mrb[8].mxu0 }
 0x574   : > { %v1131_v12 = vadd.f32 %v2418_v10, %v1130_v11  ;;  %v2575_v13 = vpop.f32.mrb[9].mxu0  ;;  %v2434_v10 = vld [vmem:[#allocation14 + $0x2] ss:$0 sm:$0xff] }
 0x575   : > { %v1133_v14 = vpop.f32.mrb[10].mxu0 }
 0x576   : > { %v1136_v16 = vpack.c.bf16 %v1131_v12, %v1131_v12  ;;  %v2576_v17 = vpop.f32.mrb[11].mxu0 }
 0x577   : > { %v2430_v17 = vld [vmem:[#allocation11 + $0x2] ss:$0 sm:$0xff] }
 0x578   : > { %v1207_v18 = vsel %vm889_vm2, %v1136_v16, 0 }
 0x579   : > { %2586 = vmatpush3.bf16.xpose.msra.mxu0 %v1207_v18 }
 0x57a   : > { %2597 = vmatprep.subr.bf16.mxu0 %v3383_v0 }
 0x580   : > { %2588 = vmatmul.mubr.msk.bf16.vlgmr.msra.gmra.mrb[12].mxu0 %vm889_vm2, %v1070_v20 }
 0x581   : > { %2599 = vmatprep.mubr.msk.bf16.mxu0 %vm3384_vm0, %v3383_v0  ;;  %2598 = vmatpush3.bf16.msra.mxu0 %v1317_v57 }
 0x582   : > { %2603 = vmatprep.subr.bf16.mxu0 %v3383_v0 }
 0x653   : > { %v1243_v23 = vpop.f32.mrb[12].mxu0 }
 0x654   : > { %v1249_v24 = vmul.f32 0.35355338, %v1243_v23  ;;  %v2589_v25 = vpop.f32.mrb[13].mxu0  ;;  %v2890_v23 = vld [vmem:[#allocation13 + $0x38] sm:$0xff]  }
 0x655   : > { %v1246_v26 = vpop.f32.mrb[14].mxu0  ;;  %v2892_v25 = vld [vmem:[#allocation16 + $0x28] sm:$0xff]  }
 0x656   : > { %v1250_v27 = vmul.f32 %v1249_v24, %v3969_v34  ;;  %v2590_v28 = vpop.f32.mrb[15].mxu0  ;;  %v2891_v24 = vld [vmem:[#allocation16 + $0x20] sm:$0xff]  }
 0x658   : > { %v1251_v30 = vsel %vm685_vm3, %v1250_v27, -1e+32 }
 0x659   : > { %v1252_v33 = vsel %vm889_vm2, %v1251_v30, -inf }
 0x65a   : > { %1253 = vmax.xlane.f32.xlu1 %v1252_v33 }
 0x6e7   : > { %v1254_v35 = vpop.xlane.xlu1 %1253 }
 0x6e8   : > { %v1255_v36 = vsub.f32 %v1251_v30, %v1254_v35 }
 0x6ea   : > { %v1256_v37 = vmul.f32 1.442695, %v1255_v36 }
 0x6ec   : > { %2899 = vpow2.f32 %v1256_v37 }
 0x6f6   : > { %v2900_v38 = vpop.eup %2899 }
 0x6f7   : > { %v1258_v39 = vsel %vm889_vm2, %v2900_v38, 0.0 }
 0x6f8   : > { %1259 = vadd.xlane.f32.xlu1 %v1258_v39 }
 0x785   : > { %v1260_v48 = vpop.xlane.xlu1 %1259 }
 0x786   : > { %2901 = vrcp.f32 %v1260_v48 }
 0x790   : > { %v2902_v49 = vpop.eup %2901 }
 0x791   : > { %v1262_v50 = vmul.f32 %v2902_v49, %v2900_v38 }
 0x793   : > { %v1263_v52 = vpack.c.bf16 %v1262_v50, %v1262_v50 }
 0x795   : > { %2594 = vmatmul.mubr.msk.bf16.vlgmr.msra.gmra.mrb[20].mxu1 %vm889_vm2, %v1263_v52 }
 0x796   : > { %2610 = vmatpush3.bf16.msra.mxu1 %v2883_v51  ;;  %2613 = vmatprep.mubr.msk.bf16.mxu1 %vm3384_vm0, %v3383_v0 }
 0x797   : > { %2611 = vmatprep.subr.bf16.mxu1 %v3383_v0 }
 0x79a   : > { %2612 = vmatpush3.bf16.msra.mxu1 %v2884_v53 }
 0x79b   : > { %2617 = vmatprep.subr.bf16.mxu1 %v3383_v0 }
 0x79d   : > { %2614 = vmatmul.mubr.msk.bf16.vlgmr.msra.gmra.mrb[24].mxu1 %vm710_vm1, %v3931_v5 }
 0x79e   : > { %2618 = vmatpush3.bf16.msra.mxu1 %v2885_v54  ;;  %2621 = vmatprep.mubr.msk.bf16.mxu1 %vm3384_vm0, %v3383_v0 }
 0x79f   : > { %2619 = vmatprep.subr.bf16.mxu1 %v3383_v0 }
 0x7a2   : > { %2620 = vmatpush3.bf16.msra.mxu1 %v2886_v55 }
 0x7a3   : > { %2633 = vmatprep.subr.bf16.mxu1 %v3383_v0 }
 0x7a5   : > { %2622 = vmatmul.mubr.msk.bf16.vlgmr.msra.gmra.mrb[28].mxu1 %vm710_vm1, %v3941_v8 }
 0x7a6   : > { %2635 = vmatprep.mubr.msk.bf16.mxu1 %vm3384_vm0, %v3383_v0 }
 0x868   : > { %v1304_v59 = vpop.f32.mrb[20].mxu1 }
 0x869   : > { %v1310_v60 = vpack.c.bf16 %v1304_v59, %v1304_v59  ;;  %v2595_v61 = vpop.f32.mrb[21].mxu1  ;;  %v2438_v59 = vld [vmem:[#allocation17 + $0x2] ss:$0 sm:$0xff] }
 0x86a   : > { %v1307_v63 = vpop.f32.mrb[22].mxu1 }
 0x86b   : > { %v2596_v1 = vpop.f32.mrb[23].mxu1  ;;  %2600 = vmatmul.mubr.msk.bf16.vlgmr.msra.gmra.mrb[16].mxu0 %vm889_vm2, %v1310_v60 }
 0x86c   : > { %2604 = vmatpush3.bf16.msra.mxu0 %v1363_v62  ;;  %2605 = vmatprep.mubr.msk.bf16.mxu0 %vm3384_vm0, %v3383_v0 }
 0x86d   : > { %2625 = vmatprep.subr.bf16.mxu0 %v3383_v0 }
 0x870   : > { %v1464_v2 = vpop.f32.mrb[24].mxu1 }
 0x871   : > { %v2615_v3 = vpop.f32.mrb[25].mxu1  ;;  %v1465_v19 = vadd.f32 %v2430_v17, %v1464_v2 }
 0x872   : > { %v1467_v6 = vpop.f32.mrb[26].mxu1 }
 0x873   : > { %v2616_v7 = vpop.f32.mrb[27].mxu1  ;;  %v1470_v20 = vpack.c.bf16 %v1465_v19, %v1465_v19 }
 0x877   : > { %2606 = vmatmul.mubr.msk.bf16.vlgmr.msra.gmra.mrb[16].mxu0 %vm889_vm2, %v1003_v9 }
 0x878   : > { %v1530_v11 = vpop.f32.mrb[28].mxu1  ;;  %2629 = vmatprep.mubr.msk.bf16.mxu0 %vm3384_vm0, %v3383_v0  ;;  %2626 = vmatpush3.bf16.msra.mxu0 %v2891_v24 }
 0x879   : > { %v1531_v12 = vadd.f32 %v2434_v10, %v1530_v11  ;;  %v2623_v13 = vpop.f32.mrb[29].mxu1  ;;  %2627 = vmatprep.subr.bf16.mxu0 %v3383_v0 }
 0x87a   : > { %v1533_v14 = vpop.f32.mrb[30].mxu1 }
 0x87b   : > { %v1536_v15 = vpack.c.bf16 %v1531_v12, %v1531_v12  ;;  %v2624_v16 = vpop.f32.mrb[31].mxu1 }
 0x87c   : > { %2628 = vmatpush3.bf16.msra.mxu0 %v2892_v25 }
 0x87d   : > { %v1607_v18 = vsel %vm889_vm2, %v1536_v15, 0  ;;  %2639 = vmatprep.subr.bf16.mxu0 %v3383_v0 }
 0x87e   : > { %2634 = vmatpush3.bf16.xpose.msra.mxu1 %v1607_v18 }
 0x87f   : > { %2651 = vmatprep.subr.bf16.mxu1 %v3383_v0  ;;  %2630 = vmatmul.mubr.msk.bf16.vlgmr.msra.gmra.mrb[20].mxu0 %vm710_vm1, %v3958_v29 }
 0x880   : > { %2641 = vmatprep.mubr.msk.bf16.mxu0 %vm3384_vm0, %v3383_v0 }
 0x885   : > { %2636 = vmatmul.mubr.msk.bf16.vlgmr.msra.gmra.mrb[32].mxu1 %vm889_vm2, %v1470_v20 }
 0x886   : > { %2652 = vmatpush3.bf16.msra.mxu1 %v2887_v4  ;;  %2655 = vmatprep.mubr.msk.bf16.mxu1 %vm3384_vm0, %v3383_v0  ;;  %v1717_v4 = vsel %vm959_vm4, %v1712_v32, 0 }
 0x887   : > { %2653 = vmatprep.subr.bf16.mxu1 %v3383_v0 }
 0x88a   : > { %2654 = vmatpush3.bf16.msra.mxu1 %v2888_v21  ;;  %v2893_v21 = vld [vmem:[#allocation16 + $0x30] sm:$0xff]  }
 0x88b   : > { %2659 = vmatprep.subr.bf16.mxu1 %v3383_v0 }
 0x88d   : > { %2656 = vmatmul.mubr.msk.bf16.vlgmr.msra.gmra.mrb[36].mxu1 %vm710_vm1, %v3931_v5 }
 0x88e   : > { %2660 = vmatpush3.bf16.msra.mxu1 %v2889_v22  ;;  %2663 = vmatprep.mubr.msk.bf16.mxu1 %vm3384_vm0, %v3383_v0 }
 0x88f   : > { %2661 = vmatprep.subr.bf16.mxu1 %v3383_v0 }
 0x892   : > { %2662 = vmatpush3.bf16.msra.mxu1 %v2890_v23 }
 0x893   : > { %2675 = vmatprep.subr.bf16.mxu1 %v3383_v0 }
 0x895   : > { %2664 = vmatmul.mubr.msk.bf16.vlgmr.msra.gmra.mrb[40].mxu1 %vm710_vm1, %v3941_v8 }
 0x896   : > { %2677 = vmatprep.mubr.msk.bf16.mxu1 %vm3384_vm0, %v3383_v0 }
 0x952   : > { %v1596_v56 = vpop.f32.mrb[20].mxu0 }
 0x953   : > { %v2631_v57 = vpop.f32.mrb[21].mxu0  ;;  %v1597_v61 = vadd.f32 %v2438_v59, %v1596_v56 }
 0x954   : > { %v1599_v58 = vpop.f32.mrb[22].mxu0 }
 0x955   : > { %v2632_v60 = vpop.f32.mrb[23].mxu0  ;;  %v1602_v62 = vpack.c.bf16 %v1597_v61, %v1597_v61 }
 0x957   : > { %v1668_v63 = vsel %vm959_vm4, %v1602_v62, 0 }
 0x958   : > { %v1643_v5 = vpop.f32.mrb[32].mxu1  ;;  %2640 = vmatpush3.bf16.msra.mxu0 %v1668_v63 }
 0x959   : > { %v1649_v26 = vmul.f32 0.35355338, %v1643_v5  ;;  %v2637_v8 = vpop.f32.mrb[33].mxu1  ;;  %2645 = vmatprep.subr.bf16.mxu0 %v3383_v0  ;;  %v2894_v5 = vld [vmem:[#allocation16 + $0x38] sm:$0xff]  }
 0x95a   : > { %v1646_v27 = vpop.f32.mrb[34].mxu1  ;;  %v2453_v8 = vld [vmem:[#allocation17 + $0x3] ss:$0 sm:$0xff] }
 0x95b   : > { %v1650_v28 = vmul.f32 %v1649_v26, %v3969_v34  ;;  %v2638_v30 = vpop.f32.mrb[35].mxu1 }
 0x95d   : > { %v1651_v33 = vsel %vm685_vm3, %v1650_v28, -1e+32 }
 0x95e   : > { %v1652_v35 = vsel %vm889_vm2, %v1651_v33, -inf }
 0x95f   : > { %1653 = vmax.xlane.f32.xlu1 %v1652_v35 }
 0x960   : > { %v1819_v36 = vpop.f32.mrb[36].mxu1 }
 0x961   : > { %v2657_v37 = vpop.f32.mrb[37].mxu1  ;;  %v1820_v48 = vadd.f32 %v2445_v44, %v1819_v36 }
 0x962   : > { %v1822_v38 = vpop.f32.mrb[38].mxu1 }
 0x963   : > { %v2658_v39 = vpop.f32.mrb[39].mxu1  ;;  %v1825_v50 = vpack.c.bf16 %v1820_v48, %v1820_v48 }
 0x968   : > { %v1885_v41 = vpop.f32.mrb[40].mxu1 }
 0x969   : > { %v1886_v42 = vadd.f32 %v2449_v40, %v1885_v41  ;;  %v2665_v43 = vpop.f32.mrb[41].mxu1 }
 0x96a   : > { %v1888_v45 = vpop.f32.mrb[42].mxu1 }
 0x96b   : > { %v1891_v46 = vpack.c.bf16 %v1886_v42, %v1886_v42  ;;  %v2666_v47 = vpop.f32.mrb[43].mxu1 }
 0x96c   : > { %v2460_v47 = vld [vmem:[#allocation20] ss:$0 sm:$0xff] }
 0x96d   : > { %v1962_v49 = vsel %vm889_vm2, %v1891_v46, 0 }
 0x96e   : > { %2676 = vmatpush3.bf16.xpose.msra.mxu1 %v1962_v49 }
 0x975   : > { %2678 = vmatmul.mubr.msk.bf16.vlgmr.msra.gmra.mrb[44].mxu1 %vm889_vm2, %v1825_v50 }
 0x9ec   : > { %v1654_v51 = vpop.xlane.xlu1 %1653 }
 0x9ed   : > { %v1655_v52 = vsub.f32 %v1651_v33, %v1654_v51 }
 0x9ef   : > { %v1656_v53 = vmul.f32 1.442695, %v1655_v52 }
 0x9f1   : > { %2903 = vpow2.f32 %v1656_v53 }
 0x9fb   : > { %v2904_v54 = vpop.eup %2903 }
 0x9fc   : > { %v1658_v55 = vsel %vm889_vm2, %v2904_v54, 0.0 }
 0x9fd   : > { %1659 = vadd.xlane.f32.xlu1 %v1658_v55 }
 0xa48   : > { %v1998_v1 = vpop.f32.mrb[44].mxu1 }
 0xa49   : > { %v2004_v2 = vmul.f32 0.35355338, %v1998_v1  ;;  %v2679_v3 = vpop.f32.mrb[45].mxu1 }
 0xa4a   : > { %v2001_v6 = vpop.f32.mrb[46].mxu1 }
 0xa4b   : > { %v2005_v7 = vmul.f32 %v2004_v2, %v3969_v34  ;;  %v2680_v9 = vpop.f32.mrb[47].mxu1 }
 0xa4d   : > { %v2006_v10 = vsel %vm685_vm3, %v2005_v7, -1e+32 }
 0xa4e   : > { %v2007_v11 = vsel %vm889_vm2, %v2006_v10, -inf }
 0xa4f   : > { %2008 = vmax.xlane.f32.xlu1 %v2007_v11 }
 0xa8a   : > { %v1660_v12 = vpop.xlane.xlu1 %1659 }
 0xa8b   : > { %2905 = vrcp.f32 %v1660_v12 }
 0xa95   : > { %v2906_v13 = vpop.eup %2905 }
 0xa96   : > { %v1662_v14 = vmul.f32 %v2906_v13, %v2904_v54 }
 0xa98   : > { %v1663_v15 = vpack.c.bf16 %v1662_v14, %v1662_v14 }
 0xa9a   : > { %2642 = vmatmul.mubr.msk.bf16.vlgmr.msra.gmra.mrb[24].mxu0 %vm889_vm2, %v1663_v15 }
 0xa9b   : > { %2647 = vmatprep.mubr.msk.bf16.mxu0 %vm3384_vm0, %v3383_v0  ;;  %2646 = vmatpush3.bf16.msra.mxu0 %v1717_v4 }
 0xa9c   : > { %2667 = vmatprep.subr.bf16.mxu0 %v3383_v0 }
 0xadc   : > { %v2009_v16 = vpop.xlane.xlu1 %2008 }
 0xadd   : > { %v2010_v34 = vsub.f32 %v2006_v10, %v2009_v16 }
 0xadf   : > { %v2011_v17 = vmul.f32 1.442695, %v2010_v34 }
 0xae1   : > { %2907 = vpow2.f32 %v2011_v17 }
 0xaeb   : > { %v2908_v18 = vpop.eup %2907 }
 0xaec   : > { %v2013_v19 = vsel %vm889_vm2, %v2908_v18, 0.0 }
 0xaed   : > { %2014 = vadd.xlane.f32.xlu1 %v2013_v19 }
 0xb6d   : > { %v1704_v20 = vpop.f32.mrb[24].mxu0 }
 0xb6e   : > { %v1710_v22 = vpack.c.bf16 %v1704_v20, %v1704_v20  ;;  %v2643_v23 = vpop.f32.mrb[25].mxu0 }
 0xb6f   : > { %v1707_v24 = vpop.f32.mrb[26].mxu0 }
 0xb70   : > { %v2644_v25 = vpop.f32.mrb[27].mxu0  ;;  %2648 = vmatmul.mubr.msk.bf16.vlgmr.msra.gmra.mrb[16].mxu0 %vm889_vm2, %v1710_v22 }
 0xb71   : > { %2668 = vmatpush3.bf16.msra.mxu0 %v2893_v21  ;;  %2671 = vmatprep.mubr.msk.bf16.mxu0 %vm3384_vm0, %v3383_v0 }
 0xb72   : > { %2669 = vmatprep.subr.bf16.mxu0 %v3383_v0 }
 0xb75   : > { %2670 = vmatpush3.bf16.msra.mxu0 %v2894_v5 }
 0xb76   : > { %2681 = vmatprep.subr.bf16.mxu0 %v3383_v0 }
 0xb78   : > { %2672 = vmatmul.mubr.msk.bf16.vlgmr.msra.gmra.mrb[28].mxu0 %vm710_vm1, %v3958_v29  ;;  %v2067_v29 = vld [vmem:[#allocation19 + $0xc] sm:$0xf] }
 0xb79   : > { %2683 = vmatprep.mubr.msk.bf16.mxu0 %vm3384_vm0, %v3383_v0  ;;  %v2072_v41 = vsel %vm959_vm4, %v2067_v29, 0 }
 0xb7a   : > { %v2015_v26 = vpop.xlane.xlu1 %2014 }
 0xb7b   : > { %2909 = vrcp.f32 %v2015_v26 }
 0xb85   : > { %v2910_v27 = vpop.eup %2909 }
 0xb86   : > { %v2017_v36 = vmul.f32 %v2910_v27, %v2908_v18 }
 0xb88   : > { %v2018_v40 = vpack.c.bf16 %v2017_v36, %v2017_v36 }
 0xc4b   : > { %v1951_v28 = vpop.f32.mrb[28].mxu0 }
 0xc4c   : > { %v1952_v30 = vadd.f32 %v2453_v8, %v1951_v28  ;;  %v2673_v33 = vpop.f32.mrb[29].mxu0 }
 0xc4d   : > { %v1954_v35 = vpop.f32.mrb[30].mxu0 }
 0xc4e   : > { %v1957_v37 = vpack.c.bf16 %v1952_v30, %v1952_v30  ;;  %v2674_v38 = vpop.f32.mrb[31].mxu0 }
 0xc50   : > { %v2023_v39 = vsel %vm959_vm4, %v1957_v37, 0 }
 0xc51   : > { %2682 = vmatpush3.bf16.msra.mxu0 %v2023_v39 }
 0xc52   : > { %2687 = vmatprep.subr.bf16.mxu0 %v3383_v0 }
 0xc54   : > { %2684 = vmatmul.mubr.msk.bf16.vlgmr.msra.gmra.mrb[32].mxu0 %vm889_vm2, %v2018_v40 }
 0xc55   : > { %2689 = vmatprep.mubr.msk.bf16.mxu0 %vm3384_vm0, %v3383_v0  ;;  %2688 = vmatpush3.bf16.msra.mxu0 %v2072_v41 }
 0xd27   : > { %v2059_v42 = vpop.f32.mrb[32].mxu0 }
 0xd28   : > { %v2065_v43 = vpack.c.bf16 %v2059_v42, %v2059_v42  ;;  %v2685_v44 = vpop.f32.mrb[33].mxu0 }
 0xd29   : > { %v2062_v45 = vpop.f32.mrb[34].mxu0 }
 0xd2a   : > { %v2686_v46 = vpop.f32.mrb[35].mxu0  ;;  %2690 = vmatmul.mubr.msk.bf16.vlgmr.msra.gmra.mrb[16].mxu0 %vm889_vm2, %v2065_v43 }
 0xdfd   : > { %v2108_v0 = vpop.f32.mrb[16].mxu0 }
 0xdfe   : > { %v2118_v48 = vsel %vm2115_vm5, 0.0, %v2108_v0  ;;  %v2691_v49 = vpop.f32.mrb[17].mxu0 }
 0xdff   : > { %v2126_v50 = vadd.f32 %v2460_v47, %v2118_v48  ;;  %v2111_v51 = vpop.f32.mrb[18].mxu0 }
 0xe00   : > { %v2692_v31 = vpop.f32.mrb[19].mxu0 }
 0xe01   : > { %2127 = vst.msk [vmem:[%s670_s24] sm:$0xff] %vm710_vm1, %v2126_v50 }
 0xe02   : > { %3268 = shalt.err (!%p3265_p12)
}
 0xe03   : > { %s3269_s9 = scalar_lea.hbm %s4110_s30, 128  ;;  %s3273_s1 = scalar_lea.hbm %s4258_s19, 256 }
 0xe04   : > { %p3270_p6 = scmp.ne.s32.totalorder %s4110_s30, %s3269_s9  ;;  %p3274_p3 = scmp.lt.u32.totalorder %s4110_s30, %s4258_s19 }
 0xe05   : > { %p3275_p10 = scmp.lt.u32.totalorder %s3273_s1, %s3269_s9  ;;  %p3277_p2 = scmp.lt.u32.totalorder %s3269_s9, %s4110_s30 }
 0xe06   : > { %p3271_p9 = pnand %p3270_p6, %p4259_p4 }
 0xe07   : > { %p3276_p5 = por %p3275_p10, %p3274_p3 }
 0xe08   : > { %p3272_p0 = pneg %p3271_p9 }
 0xe09   : > { %p3278_p13 = por %p3277_p2, %p3276_p5 }
 0xe0b   : > { %p3279_p1 = pnand %p3278_p13, %p3272_p0 }
 0xe0d   : > { %3282 = shalt.err (!%p3279_p1)
}
 0xe0e   : > { %2745 = dma.vmem_to_hbm [thread:$0]  (%p4259_p4), %s4112_s21, 128, %s4110_s30, %s2129_s29  }
 0xe0f PF: > { %s4260_s3 = sld [smem:[#allocation32_spill]]  ;;  %s4261_s20 = sld [smem:[#allocation38_spill]] }
 0xe10   : > { %p4263_p7 = scmp.ge.s32.totalorder %s3365_s26, 2 }
 0xe15   : > { %s2155_s27 = sand.u32 1, %s4260_s3   ;;  %p4262_p11 = scmp.ne.s32.totalorder %s4261_s20, 0 }
 0xe16   : > { %s2156_s2 = scalar_lea.sflag [#allocation4], %s2155_s27 }
 0xe17   : > { %p2786_p8 = pnand %p4263_p7, %p4262_p11 }
 0xe19   : > { %3340 = dma.done.wait (!%p2786_p8), %s2156_s2, 128  }
 0xe1a   : > { %3342 = vsyncadd (!%p2786_p8), %s2156_s2, 4294967168  ;;  %s38_s26 = sadd.s32 1, %s3365_s26   ;;  %s4264_s14 = sld [smem:[#allocation37_spill]] }
 0xe1b   : > { %p35_p12 = scmp.ge.s32.totalorder %s38_s26, 4   ;;  %s4265_s24 = sld [smem:[#allocation34_spill]] }
 0xe1c   : > { %s4266_s25 = sld [smem:[#allocation36_spill]]  ;;  %s4267_s21 = smov %s3349_s22 }
 0xe1d   : > { %s4268_s22 = smov %s3353_s23  ;;  %37 = sbr.rel (!%p35_p12) target bundleno = 24 (0x18), region = 203 }
 0xe20   : > { %s4269_s23 = smov %s4264_s14 }
 0xe24   :  { %2161 = vsyncpa [#allocation3], 1 }
 0xe25   :  { %2163 = vsyncpa [#allocation3 + $0x1], 1 }
 0xe26   :  { %2164 = vsyncpa [#allocation6], 1 }
 0xe27   :  { %2166 = vsyncpa [#allocation6 + $0x1], 1 }
 0xe28   :  { %2167 = vsyncpa [#allocation9], 1 }
 0xe29   :  { %2169 = vsyncpa [#allocation9 + $0x1], 1 }
 0xe2a   :  { %2170 = vsyncpa [#allocation12], 1 }
 0xe2b   :  { %2171 = vsyncpa [#allocation15], 1 }
 0xe2c   :  { %2172 = vsyncpa [#allocation18], 1 }
 0xe2d   :  { %2173 = vsyncpa [#allocation21], 1 }
 0xe2e   :  { %2174 = vsyncpa [#allocation4], 1 }
 0xe2f   :  { %2176 = vsyncpa [#allocation4 + $0x1], 1 }

</bundles_post_ra>
